<compile_context>
chip_gen: v7x
topology: tpu7x:2x2x1
jax: 0.10.0
libtpu: 0.0.40
codegen_flags: <defaults>
</compile_context>

<pallas_src>
import math
import functools

import numpy as np
import jax
import jax.numpy as jnp
from jax.experimental import pallas as pl
from jax.experimental.pallas import tpu as pltpu


def _cosine_pe_kernel(inv_freq_ref, offset_ref, phase_ref, o_ref, *, ppr):
    """o_ref tile: (1, rows_tile, lane).

    out = sin((row*ppr + offset) * inv_freq + phase), where `offset` is the
    within-row position index (lane // d_model) and `phase` is 0 or pi/2
    (cos lanes).  row*ppr + offset is an exact integer in f32, so only one
    rounding multiply separates us from the PyTorch reference angle.
    """
    rows_tile = o_ref.shape[1]
    # Thin (1, rows_tile, 1) absolute row index; broadcast across lanes below.
    row = jax.lax.broadcasted_iota(jnp.int32, (1, rows_tile, 1), 1)
    row = row + pl.program_id(0) * rows_tile
    pos = row.astype(jnp.float32) * float(ppr) + offset_ref[...]
    o_ref[...] = jnp.sin(pos * inv_freq_ref[...] + phase_ref[...])


def _pick_rows_tile(total_rows, lane_width, tile_bytes):
    """Rows per output tile.

    ~tile_bytes per tile (double-buffered ~= 2x that of VMEM), second-to-last
    block dim a multiple of 8 (or full extent), and an even grid-step count
    preferred so v7x's two TensorCores split the parallel axis evenly.
    """
    bytes_per_row = 4 * lane_width
    if total_rows * bytes_per_row <= tile_bytes or total_rows <= 8:
        return total_rows                      # one full-extent tile, one step
    max_tile_rows = max(8, (tile_bytes // bytes_per_row) // 8 * 8)
    steps = pl.cdiv(total_rows, max_tile_rows)
    if steps % 2:
        steps += 1                             # even split across 2 TCs (v7x)
    rows_tile = max_tile_rows
    for _ in range(3):                         # bounded nudge toward even steps
        rows_tile = (pl.cdiv(total_rows, steps) + 7) // 8 * 8
        actual = pl.cdiv(total_rows, rows_tile)
        if actual % 2 == 0 or actual <= 1:
            break
        steps = actual + 1
    return rows_tile


@functools.lru_cache(maxsize=None)
def _pe_table(d_model, max_len, tile_bytes=4 << 20):
    """Build the full (1, max_len, d_model) PE table once (cached)."""
    assert d_model % 2 == 0, "PyTorch module only well-defined for even d_model"

    # Lane-dense fold: pack ppr consecutive positions per 128-aligned lane row.
    ppr = 128 // math.gcd(d_model, 128)
    if d_model * ppr > 65536:          # degenerate huge-lane fold: skip folding
        ppr = 1
    lane = d_model * ppr
    padded_len = pl.cdiv(max_len, ppr) * ppr
    total_rows = padded_len // ppr

    # Per-lane constants (host, float64 then cast to f32):
    #   f = lane_idx % d_model   (feature index)
    #   inv_freq = exp(-2*(f//2)*ln(1e4)/d_model)
    #   offset   = lane_idx // d_model   (position offset within a folded row)
    #   phase    = (f % 2) * pi/2        (cos lanes via sin(x + pi/2))
    l = np.arange(lane)
    f = l % d_model
    inv_freq = np.exp(-(f // 2) * 2.0 * (math.log(10000.0) / d_model))
    inv_freq = inv_freq.astype(np.float32).reshape(1, 1, lane)
    offset = (l // d_model).astype(np.float32).reshape(1, 1, lane)
    phase = ((f % 2) * (np.pi / 2.0)).astype(np.float32).reshape(1, 1, lane)

    rows_tile = _pick_rows_tile(total_rows, lane, tile_bytes)
    grid = (pl.cdiv(total_rows, rows_tile),)   # ragged last block handled by Pallas

    table = pl.pallas_call(
        functools.partial(_cosine_pe_kernel, ppr=ppr),
        out_shape=jax.ShapeDtypeStruct((1, total_rows, lane), jnp.float32),
        grid_spec=pltpu.PrefetchScalarGridSpec(
            num_scalar_prefetch=0,
            grid=grid,
            in_specs=[
                pl.BlockSpec((1, 1, lane), lambda i: (0, 0, 0)),
                pl.BlockSpec((1, 1, lane), lambda i: (0, 0, 0)),
                pl.BlockSpec((1, 1, lane), lambda i: (0, 0, 0)),
            ],
            out_specs=pl.BlockSpec((1, rows_tile, lane), lambda i: (0, i, 0)),
        ),
        compiler_params=pltpu.CompilerParams(
            dimension_semantics=("parallel",)),
    )(jnp.asarray(inv_freq), jnp.asarray(offset), jnp.asarray(phase))

    # Row-major unfold (position-major/feature-minor) is a pure reshape; then
    # drop the ppr padding rows.
    return table.reshape(1, padded_len, d_model)[:, :max_len, :]


def cosine_positional_embedding(x, d_model, max_len=512):
    """Forward: weight[:, :x.shape[1], :]; weight built once by the kernel."""
    seq = x.shape[1]
    assert seq <= max_len
    assert x.shape[2] == d_model
    table = _pe_table(d_model, max_len)
    return table[:, :seq, :]


def _reference_pe(seq, d_model):
    pos = np.arange(seq, dtype=np.float32)[:, None]
    div_term = np.exp(np.arange(0, d_model, 2, dtype=np.float32)
                      * -(math.log(10000.0) / d_model))
    pe = np.zeros((seq, d_model), dtype=np.float32)
    pe[:, 0::2] = np.sin(pos * div_term)
    pe[:, 1::2] = np.cos(pos * div_term)
    return pe[None]


if __name__ == "__main__":
    key = jax.random.PRNGKey(0)

    # Config 1: module defaults, small shapes (batch=2, seq=8, hidden=32).
    # d_model=32 -> ppr=4, lane=128, single full-extent tile.
    batch, seq, d_model, max_len = 2, 8, 32, 512
    # x's values are never read by the forward pass; only its seq dim matters.
    x = jax.random.normal(key, (batch, seq, d_model), dtype=jnp.float32)
    out = jax.block_until_ready(
        cosine_positional_embedding(x, d_model=d_model, max_len=max_len))
    assert out.shape == (1, seq, d_model)
    np.testing.assert_allclose(np.asarray(out), _reference_pe(seq, d_model),
                               rtol=2e-5, atol=2e-5)

    # Config 2: non-power-of-two d_model (gcd fold: ppr=8, lane=384) and a
    # max_len that needs ppr padding (500 -> 504).  A small tile_bytes forces
    # the multi-step cdiv grid with a ragged last output block.
    d_model2, max_len2, seq2 = 48, 500, 64
    tbl2 = jax.block_until_ready(
        _pe_table(d_model2, max_len2, tile_bytes=16 << 10))
    assert tbl2.shape == (1, max_len2, d_model2)
    # Full-table check: the cos->sin(+pi/2) trick drifts ~ulp(angle) (~3e-5 at
    # position ~500 on the highest-frequency lane), hence the looser atol here.
    np.testing.assert_allclose(np.asarray(tbl2),
                               _reference_pe(max_len2, d_model2),
                               rtol=2e-5, atol=1e-4)

    # Same config through the forward wrapper (default 4 MiB tiles).
    x2 = jax.random.normal(key, (batch, seq2, d_model2), dtype=jnp.float32)
    out2 = jax.block_until_ready(
        cosine_positional_embedding(x2, d_model=d_model2, max_len=max_len2))
    assert out2.shape == (1, seq2, d_model2)
    np.testing.assert_allclose(np.asarray(out2), _reference_pe(seq2, d_model2),
                               rtol=2e-5, atol=2e-5)

    print("KERNEL_OK")
</pallas_src>

<mosaic_0001>
module attributes {stable_mosaic.version = 11 : i64} {
  func.func @_cosine_pe_kernel(%arg0: i32, %arg1: memref<1x1x128xf32, #tpu.memory_space<vmem>>, %arg2: memref<1x1x128xf32, #tpu.memory_space<vmem>>, %arg3: memref<1x1x128xf32, #tpu.memory_space<vmem>>, %arg4: memref<1x128x128xf32, #tpu.memory_space<vmem>>) attributes {dimension_semantics = [#tpu.dimension_semantics<parallel>], iteration_bounds = array<i64: 1>, scalar_prefetch = 0 : i64, scratch_operands = 0 : i64, tpu.core_type = #tpu.core_type<tc>, window_params = [{pipeline_mode = #tpu.pipeline_mode<synchronous>, transform_indices = @transform_0, window_bounds = array<i64: 1, 1, 128>}, {pipeline_mode = #tpu.pipeline_mode<synchronous>, transform_indices = @transform_1, window_bounds = array<i64: 1, 1, 128>}, {pipeline_mode = #tpu.pipeline_mode<synchronous>, transform_indices = @transform_2, window_bounds = array<i64: 1, 1, 128>}, {transform_indices = @transform_3, window_bounds = array<i64: 1, 128, 128>}]} {
    %0 = tpu.iota {dimensions = array<i32: 1>} : vector<1x128x1xi32>
    %c128_i32 = arith.constant 128 : i32
    %1 = arith.muli %arg0, %c128_i32 : i32
    %2 = vector.broadcast %1 : i32 to vector<1x128x1xi32>
    %3 = arith.addi %0, %2 : vector<1x128x1xi32>
    %4 = arith.sitofp %3 : vector<1x128x1xi32> to vector<1x128x1xf32>
    %cst = arith.constant 4.000000e+00 : f32
    %5 = vector.broadcast %cst : f32 to vector<1x128x1xf32>
    %6 = arith.mulf %4, %5 : vector<1x128x1xf32>
    %c0 = arith.constant 0 : index
    %c0_0 = arith.constant 0 : index
    %c0_1 = arith.constant 0 : index
    %7 = vector.load %arg2[%c0, %c0_0, %c0_1] : memref<1x1x128xf32, #tpu.memory_space<vmem>>, vector<1x1x128xf32>
    %8 = vector.broadcast %6 : vector<1x128x1xf32> to vector<1x128x128xf32>
    %9 = vector.broadcast %7 : vector<1x1x128xf32> to vector<1x128x128xf32>
    %10 = arith.addf %8, %9 : vector<1x128x128xf32>
    %c0_2 = arith.constant 0 : index
    %c0_3 = arith.constant 0 : index
    %c0_4 = arith.constant 0 : index
    %11 = vector.load %arg1[%c0_2, %c0_3, %c0_4] : memref<1x1x128xf32, #tpu.memory_space<vmem>>, vector<1x1x128xf32>
    %12 = vector.broadcast %11 : vector<1x1x128xf32> to vector<1x128x128xf32>
    %13 = arith.mulf %10, %12 : vector<1x128x128xf32>
    %c0_5 = arith.constant 0 : index
    %c0_6 = arith.constant 0 : index
    %c0_7 = arith.constant 0 : index
    %14 = vector.load %arg3[%c0_5, %c0_6, %c0_7] : memref<1x1x128xf32, #tpu.memory_space<vmem>>, vector<1x1x128xf32>
    %15 = vector.broadcast %14 : vector<1x1x128xf32> to vector<1x128x128xf32>
    %16 = arith.addf %13, %15 : vector<1x128x128xf32>
    %17 = math.sin %16 : vector<1x128x128xf32>
    %c0_8 = arith.constant 0 : index
    %c0_9 = arith.constant 0 : index
    %c0_10 = arith.constant 0 : index
    %18 = vector.load %arg4[%c0_8, %c0_9, %c0_10] : memref<1x128x128xf32, #tpu.memory_space<vmem>>, vector<1x128x128xf32>
    tpu.vector_store %arg4[%c0_8, %c0_9, %c0_10], %17 {strides = array<i32>} : memref<1x128x128xf32, #tpu.memory_space<vmem>>, vector<1x128x128xf32>,
    return
  }
  func.func @transform_0(%arg0: i32) -> (i32, i32, i32) {
    %c0_i32 = arith.constant 0 : i32
    %c0_i32_0 = arith.constant 0 : i32
    %c0_i32_1 = arith.constant 0 : i32
    %c0_i32_2 = arith.constant 0 : i32
    return %c0_i32, %c0_i32_0, %c0_i32_1 : i32, i32, i32
  }
  func.func @transform_1(%arg0: i32) -> (i32, i32, i32) {
    %c0_i32 = arith.constant 0 : i32
    %c0_i32_0 = arith.constant 0 : i32
    %c0_i32_1 = arith.constant 0 : i32
    %c0_i32_2 = arith.constant 0 : i32
    return %c0_i32, %c0_i32_0, %c0_i32_1 : i32, i32, i32
  }
  func.func @transform_2(%arg0: i32) -> (i32, i32, i32) {
    %c0_i32 = arith.constant 0 : i32
    %c0_i32_0 = arith.constant 0 : i32
    %c0_i32_1 = arith.constant 0 : i32
    %c0_i32_2 = arith.constant 0 : i32
    return %c0_i32, %c0_i32_0, %c0_i32_1 : i32, i32, i32
  }
  func.func @transform_3(%arg0: i32) -> (i32, i32, i32) {
    %c0_i32 = arith.constant 0 : i32
    %c0_i32_0 = arith.constant 0 : i32
    %c0_i32_1 = arith.constant 0 : i32
    return %c0_i32, %arg0, %c0_i32_0 : i32, i32, i32
  }
}

</mosaic_0001>

<bundles_post_ra>
// kernel: tpu_custom_call.1
= control target key start
LH: loop header
LB: loop body
LE: loop exit
PB: predicated region body
PF: predicated region fallthrough
CT: control target
= control target key end

     0   :  { %8 = vsyncpa [#allocation3], 0  ;;  %s3461_s0 = inlined_call_operand.hbm [shape: f32[1,1,128], index: 0, kind: input, shape index: {}]   ;;  %s3462_s1 = inlined_call_operand.vmem [shape: f32[1,1,128], index: 1, kind: input, shape index: {}]   ;;  %s3463_s2 = inlined_call_operand.vmem [shape: f32[1,1,128], index: 2, kind: input, shape index: {}]   ;;  %s3464_s3 = inlined_call_operand.hbm [shape: f32[1,128,128], index: 3, kind: output, shape index: {}]  }
   0x1   :  { %9 = vsyncpa [#allocation4], 0  ;;  %s2113_s12 = smov [#allocation2]   ;;  %s2065_s16 = scalar_lea.hbm %s3461_s0, 16 }
   0x2   :  { %s16_s13 = sshll.u32 %s2113_s12, 4  ;;  %p2066_p0 = scmp.ne.s32.totalorder %s3461_s0, %s2065_s16  ;;  %s17_s13 = int_to_ptr.vmem [resolvable:$true] %s16_s13 }
   0x3   :  { %p2069_p1 = scmp.lt.u32.totalorder %s2065_s16, %s3461_s0 }
   0x5   :  { %p2071_p2 = pnand %p2069_p1, %p2066_p0 }
   0x7   :  { %2074 = shalt.err (!%p2071_p2)
}
   0x8   :  { %s2075_s21 = scalar_lea.vmem %s17_s13, 16  ;;  %s2079_s22 = scalar_lea.vmem %s17_s13, 32 }
   0x9   :  { %p2076_p3 = scmp.ne.s32.totalorder %s17_s13, %s2075_s21  ;;  %p2080_p4 = scmp.lt.s32.totalorder %s17_s13, %s17_s13 }
   0xa   :  { %p2081_p5 = scmp.lt.s32.totalorder %s2079_s22, %s2075_s21 }
   0xc   :  { %p2082_p6 = por %p2081_p5, %p2080_p4 }
   0xe   :  { %p2083_p7 = pnand %p2082_p6, %p2076_p3 }
  0x10   :  { %2086 = shalt.err (!%p2083_p7)
}
  0x11   :  { %19 = dma.hbm_to_vmem [thread:$0]  %s3461_s0, 16, %s17_s13, [#allocation3]  }
  0x12   :  { %2109 = dma.done.wait [#allocation3], 16  }
  0x13   :  { %2110 = vsyncadd [#allocation3], 4294967280  ;;  %v27_v0 = vlaneseq  ;;  %v1860_v39 = vld [vmem:[%s3462_s1] ss:$0 sm:$0xff] }
  0x14   :  { %v1861_v56 = vld [vmem:[#allocation2] ss:$0 sm:$0xff] }
  0x15   :  { %v28_v1 = vshrl.u32 %v27_v0, 7 }
  0x17   :  { %v29_v2 = vadd.s32 8, %v28_v1  ;;  %v32_v3 = vadd.s32 32, %v28_v1  ;;  %v33_v4 = vadd.s32 40, %v28_v1  ;;  %v34_v5 = vadd.s32 48, %v28_v1 }
  0x18   :  { %v35_v6 = vadd.s32 56, %v28_v1  ;;  %v36_v7 = vadd.s32 64, %v28_v1  ;;  %v37_v8 = vadd.s32 72, %v28_v1  ;;  %v38_v9 = vadd.s32 80, %v28_v1 }
  0x19   :  { %v39_v10 = vadd.s32 88, %v28_v1  ;;  %v40_v11 = vadd.s32 96, %v28_v1  ;;  %v41_v12 = vadd.s32 104, %v28_v1  ;;  %v42_v13 = vadd.s32 112, %v28_v1 }
  0x1a   :  { %v43_v14 = vadd.s32 120, %v28_v1  ;;  %v30_v15 = vadd.s32 16, %v28_v1  ;;  %v62_v16 = vcvt.s32.f32 %v28_v1  ;;  %v63_v17 = vcvt.s32.f32 %v29_v2 }
  0x1b   :  { %v66_v18 = vcvt.s32.f32 %v32_v3  ;;  %v67_v19 = vcvt.s32.f32 %v33_v4  ;;  %v68_v20 = vcvt.s32.f32 %v34_v5  ;;  %v69_v21 = vcvt.s32.f32 %v35_v6 }
  0x1c   :  { %v70_v22 = vcvt.s32.f32 %v36_v7  ;;  %v71_v23 = vcvt.s32.f32 %v37_v8  ;;  %v72_v24 = vcvt.s32.f32 %v38_v9  ;;  %v73_v25 = vcvt.s32.f32 %v39_v10  ;;  %v1862_v9 = vld [vmem:[%s3463_s2] ss:$0 sm:$0xff]  ;;  %s2120_s2 = smov [#allocation5]  }
  0x1d   :  { %v74_v26 = vcvt.s32.f32 %v40_v11  ;;  %v31_v27 = vadd.s32 24, %v28_v1  ;;  %v75_v28 = vcvt.s32.f32 %v41_v12  ;;  %v76_v29 = vcvt.s32.f32 %v42_v13  ;;  %s1848_s27 = sshll.u32 %s2120_s2, 4  ;;  %s1849_s27 = int_to_ptr.vmem [resolvable:$true] %s1848_s27 }
  0x1e   :  { %v77_v30 = vcvt.s32.f32 %v43_v14  ;;  %v64_v31 = vcvt.s32.f32 %v30_v15  ;;  %v78_v32 = vmul.f32 4.0, %v62_v16  ;;  %v79_v33 = vmul.f32 4.0, %v63_v17  ;;  %s2087_s28 = scalar_lea.vmem %s1849_s27, 2048  ;;  %p2092_p9 = scmp.lt.s32.totalorder %s1849_s27, %s1849_s27 }
  0x1f   :  { %v82_v34 = vmul.f32 4.0, %v66_v18  ;;  %v83_v35 = vmul.f32 4.0, %v67_v19  ;;  %v84_v36 = vmul.f32 4.0, %v68_v20  ;;  %v85_v37 = vmul.f32 4.0, %v69_v21  ;;  %p2088_p8 = scmp.ne.s32.totalorder %s1849_s27, %s2087_s28  ;;  %p2093_p10 = scmp.lt.s32.totalorder %s2087_s28, %s2087_s28 }
  0x20   :  { %v86_v38 = vmul.f32 4.0, %v70_v22  ;;  %v87_v40 = vmul.f32 4.0, %v71_v23  ;;  %v88_v41 = vmul.f32 4.0, %v72_v24  ;;  %v89_v42 = vmul.f32 4.0, %v73_v25 }
  0x21   :  { %v90_v43 = vmul.f32 4.0, %v74_v26  ;;  %v65_v44 = vcvt.s32.f32 %v31_v27  ;;  %v91_v45 = vmul.f32 4.0, %v75_v28  ;;  %v92_v46 = vmul.f32 4.0, %v76_v29  ;;  %p2094_p11 = por %p2093_p10, %p2092_p9 }
  0x22   :  { %v93_v47 = vmul.f32 4.0, %v77_v30  ;;  %v80_v48 = vmul.f32 4.0, %v64_v31  ;;  %v101_v49 = vadd.f32 %v1860_v39, %v78_v32  ;;  %v102_v50 = vadd.f32 %v1860_v39, %v79_v33 }
  0x23   :  { %v105_v51 = vadd.f32 %v1860_v39, %v82_v34  ;;  %v106_v52 = vadd.f32 %v1860_v39, %v83_v35  ;;  %v107_v53 = vadd.f32 %v1860_v39, %v84_v36  ;;  %v108_v54 = vadd.f32 %v1860_v39, %v85_v37  ;;  %p2095_p12 = pnand %p2094_p11, %p2088_p8 }
  0x24   :  { %v109_v55 = vadd.f32 %v1860_v39, %v86_v38  ;;  %v110_v57 = vadd.f32 %v1860_v39, %v87_v40  ;;  %v111_v58 = vadd.f32 %v1860_v39, %v88_v41  ;;  %v112_v59 = vadd.f32 %v1860_v39, %v89_v42 }
  0x25   :  { %v113_v60 = vadd.f32 %v1860_v39, %v90_v43  ;;  %v81_v61 = vmul.f32 4.0, %v65_v44  ;;  %v114_v62 = vadd.f32 %v1860_v39, %v91_v45  ;;  %v115_v63 = vadd.f32 %v1860_v39, %v92_v46 }
  0x26   :  { %v116_v0 = vadd.f32 %v1860_v39, %v93_v47  ;;  %v103_v1 = vadd.f32 %v1860_v39, %v80_v48  ;;  %v124_v2 = vmul.f32 %v1861_v56, %v101_v49  ;;  %v125_v3 = vmul.f32 %v1861_v56, %v102_v50 }
  0x27   :  { %v128_v4 = vmul.f32 %v1861_v56, %v105_v51  ;;  %v129_v5 = vmul.f32 %v1861_v56, %v106_v52  ;;  %v130_v6 = vmul.f32 %v1861_v56, %v107_v53  ;;  %v131_v7 = vmul.f32 %v1861_v56, %v108_v54 }
  0x28   :  { %v132_v8 = vmul.f32 %v1861_v56, %v109_v55  ;;  %v133_v10 = vmul.f32 %v1861_v56, %v110_v57  ;;  %v134_v11 = vmul.f32 %v1861_v56, %v111_v58  ;;  %v135_v12 = vmul.f32 %v1861_v56, %v112_v59 }
  0x29   :  { %v136_v13 = vmul.f32 %v1861_v56, %v113_v60  ;;  %v104_v14 = vadd.f32 %v1860_v39, %v81_v61  ;;  %v137_v15 = vmul.f32 %v1861_v56, %v114_v62  ;;  %v138_v16 = vmul.f32 %v1861_v56, %v115_v63 }
  0x2a   :  { %v139_v17 = vmul.f32 %v1861_v56, %v116_v0  ;;  %v126_v18 = vmul.f32 %v1861_v56, %v103_v1  ;;  %v2161_v19 = vadd.f32 %v1862_v9, %v124_v2  ;;  %v2163_v20 = vadd.f32 %v1862_v9, %v125_v3 }
  0x2b   :  { %v2165_v21 = vadd.f32 %v1862_v9, %v128_v4  ;;  %v2167_v22 = vadd.f32 %v1862_v9, %v129_v5  ;;  %v2169_v23 = vadd.f32 %v1862_v9, %v130_v6  ;;  %v2171_v24 = vadd.f32 %v1862_v9, %v131_v7 }
  0x2c   :  { %v2173_v25 = vadd.f32 %v1862_v9, %v132_v8  ;;  %v2175_v26 = vadd.f32 %v1862_v9, %v133_v10  ;;  %v2177_v27 = vadd.f32 %v1862_v9, %v134_v11  ;;  %v2179_v28 = vadd.f32 %v1862_v9, %v135_v12 }
  0x2d   :  { %v2181_v29 = vadd.f32 %v1862_v9, %v136_v13  ;;  %v2183_v30 = vadd.f32 %v1862_v9, %v137_v15  ;;  %v2185_v31 = vadd.f32 %v1862_v9, %v138_v16  ;;  %v2187_v32 = vadd.f32 %v1862_v9, %v139_v17 }
  0x2e   :  { %v163_v33 = vand.u32 2147483647, %v2161_v19  ;;  %v2190_v34 = vadd.f32 %v1862_v9, %v126_v18  ;;  %v166_v35 = vand.u32 2139095040, %v2161_v19  ;;  %v267_v36 = vand.u32 2147483647, %v2163_v20 }
  0x2f   :  { %v270_v38 = vand.u32 2139095040, %v2163_v20  ;;  %v127_v40 = vmul.f32 %v1861_v56, %v104_v14  ;;  %v2114_v1 = vmov 683565275   ;;  %v2115_v3 = vmov 2475754826  }
  0x30   :  { %v170_v37 = vand.u32 8388607, %v163_v33  ;;  %v167_v39 = vshrl.u32 %v166_v35, 23  ;;  %v274_v42 = vand.u32 8388607, %v267_v36  ;;  %v374_v44 = vand.u32 2139095040, %v2190_v34 }
  0x31   :  { %v271_v41 = vshrl.u32 %v270_v38, 23  ;;  %v371_v48 = vand.u32 2147483647, %v2190_v34  ;;  %v2201_v50 = vadd.f32 %v1862_v9, %v127_v40  ;;  %v2116_v5 = vmov 2131351028  }
  0x32   :  { %v1863_v43 = vadd.s32 4294967169, %v167_v39  ;;  %v171_v45 = vor.u32 8388608, %v170_v37  ;;  %v375_v49 = vshrl.u32 %v374_v44, 23  ;;  %v275_v51 = vor.u32 8388608, %v274_v42 }
  0x33   :  { %v1867_v46 = vadd.s32 4294967169, %v271_v41  ;;  %v2207_v59 = vand.u32 8388607, %v371_v48  ;;  %v478_v63 = vand.u32 2139095040, %v2201_v50  ;;  %v2117_v7 = vmov 2102212464  }
  0x34   :  { %v173_v47 = vadd.s32 1, %v1863_v43  ;;  %v1871_v53 = vadd.s32 4294967169, %v375_v49  ;;  %v2203_v55 = vshll.u32 %v171_v45, 8  ;;  %v2209_v61 = vshll.u32 %v275_v51, 8 }
  0x35   :  { %v277_v52 = vadd.s32 1, %v1867_v46  ;;  %v2118_v9 = vmov 920167782   ;;  %v2119_v17 = vmov 1326507024   ;;  %vm165_vm13 = vcmp.lt.s32.totalorder %v2161_v19, 0 }
  0x36   :  { %vm174_vm0 = vcmp.gt.s32.totalorder %v173_v47, 0  ;;  %v2211_v62 = vadd.s32 1, %v1871_v53  ;;  %vm2314_vm14 = vcmp.le.f32.partialorder %v163_v33, 0.7853982  ;;  %vm269_vm15 = vcmp.lt.s32.totalorder %v2163_v20, 0 }
  0x37   :  { %v175_v54 = vsel %vm174_vm0, %v173_v47, 0  ;;  %vm278_vm1 = vcmp.gt.s32.totalorder %v277_v52, 0 }
  0x38   :  { %v176_v56 = vshrl.u32 %v175_v54, 5  ;;  %v177_v57 = vand.u32 31, %v175_v54  ;;  %v279_v58 = vsel %vm278_vm1, %v277_v52, 0  ;;  %vm382_vm11 = vcmp.gt.s32.totalorder %v2211_v62, 0 }
  0x39   :  { %v281_v60 = vand.u32 31, %v279_v58  ;;  %v2219_v11 = vshrl.u32 %v279_v58, 5 }
  0x3a   :  { %v178_v0 = vsub.s32 32, %v177_v57  ;;  %v180_v2 = vshll.u32 %v2114_v1, %v177_v57  ;;  %v183_v4 = vshll.u32 %v2115_v3, %v177_v57  ;;  %v186_v6 = vshll.u32 %v2116_v5, %v177_v57 }
  0x3b   :  { %v189_v8 = vshll.u32 %v2117_v7, %v177_v57  ;;  %v192_v10 = vshll.u32 %v2118_v9, %v177_v57  ;;  %vm195_vm2 = vcmp.lt.s32.totalorder %v176_v56, 1  ;;  %vm196_vm3 = vcmp.lt.s32.totalorder %v176_v56, 2 }
  0x3c   :  { %v179_v12 = vshrl.u32 %v2114_v1, %v178_v0  ;;  %v181_v13 = vshrl.u32 %v2115_v3, %v178_v0  ;;  %v184_v14 = vshrl.u32 %v2116_v5, %v178_v0  ;;  %v187_v15 = vshrl.u32 %v2117_v7, %v178_v0 }
  0x3d   :  { %v190_v16 = vshrl.u32 %v2118_v9, %v178_v0  ;;  %v193_v18 = vshrl.u32 %v2119_v17, %v178_v0  ;;  %vm198_vm4 = vcmp.lt.s32.totalorder %v176_v56, 4  ;;  %v282_v39 = vsub.s32 32, %v281_v60 }
  0x3e   :  { %v182_v35 = vor.u32 %v181_v13, %v180_v2  ;;  %v185_v37 = vor.u32 %v184_v14, %v183_v4  ;;  %v188_v38 = vor.u32 %v187_v15, %v186_v6  ;;  %vm197_vm5 = vcmp.lt.s32.totalorder %v176_v56, 3 }
  0x3f   :  { %v191_v40 = vor.u32 %v190_v16, %v189_v8  ;;  %v194_v41 = vor.u32 %v193_v18, %v192_v10  ;;  %v284_v42 = vshll.u32 %v2114_v1, %v281_v60  ;;  %v287_v52 = vshll.u32 %v2115_v3, %v281_v60 }
  0x40   :  { %v199_v43 = vsel %vm195_vm2, %v179_v12, %v182_v35  ;;  %v200_v44 = vsel %vm198_vm4, %v188_v38, 2102212464  ;;  %v203_v45 = vsel %vm195_vm2, %v182_v35, %v185_v37  ;;  %v207_v46 = vsel %vm195_vm2, %v185_v37, %v188_v38 }
  0x41   :  { %v201_v47 = vsel %vm197_vm5, %v185_v37, %v200_v44  ;;  %v204_v49 = vsel %vm198_vm4, %v191_v40, 920167782  ;;  %v208_v51 = vsel %vm198_vm4, %v194_v41, 1326507024  ;;  %v283_v57 = vshrl.u32 %v2114_v1, %v282_v39 }
  0x42   :  { %v205_v53 = vsel %vm197_vm5, %v188_v38, %v204_v49  ;;  %v209_v54 = vsel %vm197_vm5, %v191_v40, %v208_v51  ;;  %v285_v58 = vshrl.u32 %v2115_v3, %v282_v39  ;;  %v202_v0 = vsel %vm196_vm3, %v199_v43, %v201_v47 }
  0x43   :  { %v206_v2 = vsel %vm196_vm3, %v203_v45, %v205_v53  ;;  %v210_v4 = vsel %vm196_vm3, %v207_v46, %v209_v54  ;;  %v288_v6 = vshrl.u32 %v2116_v5, %v282_v39  ;;  %v290_v16 = vshll.u32 %v2116_v5, %v281_v60 }
  0x44   :  { %v2239_v8 = vmul.u32.u64.low %v2203_v55, %v210_v4  ;;  %v2240_v10 = vmul.u32.u64.high %v2203_v55, %v210_v4, %v2239_v8  ;;  %v2243_v12 = vmul.u32.u64.low %v2203_v55, %v206_v2  ;;  %v2244_v13 = vmul.u32.u64.high %v2203_v55, %v206_v2, %v2243_v12 }
  0x45   :  { %v286_v14 = vor.u32 %v285_v58, %v284_v42  ;;  %v289_v15 = vor.u32 %v288_v6, %v287_v52  ;;  %v291_v18 = vshrl.u32 %v2117_v7, %v282_v39  ;;  %v293_v56 = vshll.u32 %v2117_v7, %v281_v60 }
  0x46   :  { %v294_v35 = vshrl.u32 %v2118_v9, %v282_v39  ;;  %v296_v37 = vshll.u32 %v2118_v9, %v281_v60  ;;  %v297_v38 = vshrl.u32 %v2119_v17, %v282_v39  ;;  %v218_v40 = vmul.u32 %v2203_v55, %v202_v0 }
  0x47   :  { %v292_v41 = vor.u32 %v291_v18, %v290_v16  ;;  %vm299_vm6 = vcmp.lt.s32.totalorder %v2219_v11, 1  ;;  %vm300_vm7 = vcmp.lt.s32.totalorder %v2219_v11, 2  ;;  %vm220_vm8 = vc.u32 %v2240_v10, %v2243_v12 }
  0x48   :  { %v221_v42 = vadd.s32 1, %v2244_v13  ;;  %v295_v43 = vor.u32 %v294_v35, %v293_v56  ;;  %vm301_vm9 = vcmp.lt.s32.totalorder %v2219_v11, 3  ;;  %v298_v44 = vor.u32 %v297_v38, %v296_v37 }
  0x49   :  { %vm302_vm10 = vcmp.lt.s32.totalorder %v2219_v11, 4  ;;  %v303_v60 = vsel %vm299_vm6, %v283_v57, %v286_v14  ;;  %v307_v39 = vsel %vm299_vm6, %v286_v14, %v289_v15  ;;  %v311_v47 = vsel %vm299_vm6, %v289_v15, %v292_v41 }
  0x4a   :  { %v222_v55 = vsel %vm220_vm8, %v221_v42, %v2244_v13  ;;  %v304_v45 = vsel %vm302_vm10, %v292_v41, 2102212464  ;;  %v308_v46 = vsel %vm302_vm10, %v295_v43, 920167782  ;;  %v312_v53 = vsel %vm302_vm10, %v298_v44, 1326507024 }
  0x4b   :  { %v223_v49 = vadd.s32 %v222_v55, %v218_v40  ;;  %v305_v51 = vsel %vm301_vm9, %v289_v15, %v304_v45  ;;  %v309_v52 = vsel %vm301_vm9, %v292_v41, %v308_v46  ;;  %v313_v0 = vsel %vm301_vm9, %v295_v43, %v312_v53 }
  0x4c   :  { %v306_v54 = vsel %vm300_vm7, %v303_v60, %v305_v51  ;;  %v310_v58 = vsel %vm300_vm7, %v307_v39, %v309_v52  ;;  %v314_v2 = vsel %vm300_vm7, %v311_v47, %v313_v0  ;;  %v383_v14 = vsel %vm382_vm11, %v2211_v62, 0 }
  0x4d   :  { %v224_v57 = vadd.s32 536870912, %v223_v49  ;;  %v2270_v4 = vmul.u32.u64.low %v2209_v61, %v310_v58  ;;  %v2271_v6 = vmul.u32.u64.high %v2209_v61, %v310_v58, %v2270_v4  ;;  %v385_v16 = vand.u32 31, %v383_v14 }
  0x4e   :  { %v2275_v8 = vmul.u32.u64.low %v2209_v61, %v314_v2  ;;  %v2276_v13 = vmul.u32.u64.high %v2209_v61, %v314_v2, %v2275_v8  ;;  %v475_v18 = vand.u32 2147483647, %v2201_v50  ;;  %v322_v56 = vmul.u32 %v2209_v61, %v306_v54 }
  0x4f   :  { %v225_v15 = vshrl.u32 %v224_v57, 30  ;;  %v379_v11 = vor.u32 8388608, %v2207_v59  ;;  %v479_v35 = vshrl.u32 %v478_v63, 23  ;;  %v325_v38 = vadd.s32 1, %v2271_v6 }
  0x50   :  { %vm324_vm12 = vc.u32 %v2276_v13, %v2270_v4  ;;  %v386_v40 = vsub.s32 32, %v385_v16  ;;  %v2293_v61 = vand.u32 8388607, %v475_v18  ;;  %v2295_v42 = vshrl.u32 %v383_v14, 5 }
  0x51   :  { %v226_v37 = vshll.u32 %v225_v15, 30  ;;  %v326_v41 = vsel %vm324_vm12, %v325_v38, %v2271_v6  ;;  %v2297_v63 = vshll.u32 %v379_v11, 8  ;;  %v1875_v43 = vadd.s32 4294967169, %v479_v35 }
  0x52   :  { %v327_v59 = vadd.s32 %v326_v41, %v322_v56  ;;  %v249_v60 = vsub.s32 4, %v225_v15  ;;  %v388_v39 = vshll.u32 %v2114_v1, %v385_v16  ;;  %v391_v55 = vshll.u32 %v2115_v3, %v385_v16 }
  0x53   :  { %v2288_v62 = vsub.s32 %v223_v49, %v226_v37  ;;  %v389_v46 = vshrl.u32 %v2115_v3, %v386_v40  ;;  %v392_v47 = vshrl.u32 %v2116_v5, %v386_v40  ;;  %v394_v49 = vshll.u32 %v2116_v5, %v385_v16 }
  0x54   :  { %v328_v45 = vadd.s32 536870912, %v327_v59  ;;  %v395_v52 = vshrl.u32 %v2117_v7, %v386_v40  ;;  %v397_v53 = vshll.u32 %v2117_v7, %v385_v16  ;;  %v398_v54 = vshrl.u32 %v2118_v9, %v386_v40 }
  0x55   :  { %v229_v44 = vsub.s32 0, %v2288_v62  ;;  %v400_v0 = vshll.u32 %v2118_v9, %v385_v16  ;;  %v401_v57 = vshrl.u32 %v2119_v17, %v386_v40  ;;  %v483_v2 = vor.u32 8388608, %v2293_v61 }
  0x56   :  { %v329_v58 = vshrl.u32 %v328_v45, 30  ;;  %v219_v8 = vadd.s32 %v2243_v12, %v2240_v10  ;;  %v250_v56 = vsel %vm165_vm13, %v249_v60, %v225_v15  ;;  %v485_v16 = vadd.s32 1, %v1875_v43 }
  0x57   :  { %v1864_v51 = vmin.u32 %v229_v44, %v2288_v62  ;;  %v387_v35 = vshrl.u32 %v2114_v1, %v386_v40  ;;  %v390_v37 = vor.u32 %v389_v46, %v388_v39  ;;  %v393_v38 = vor.u32 %v392_v47, %v391_v55 }
  0x58   :  { %v330_v11 = vshll.u32 %v329_v58, 30  ;;  %v396_v33 = vor.u32 %v395_v52, %v394_v49  ;;  %v399_v44 = vor.u32 %v398_v54, %v397_v53  ;;  %vm403_vm0 = vcmp.lt.s32.totalorder %v2295_v42, 1 }
  0x59   :  { %v231_v14 = vclz %v1864_v51  ;;  %v353_v10 = vsub.s32 4, %v329_v58  ;;  %v402_v12 = vor.u32 %v401_v57, %v400_v0  ;;  %vm406_vm1 = vcmp.lt.s32.totalorder %v2295_v42, 4 }
  0x5a   :  { %v2325_v45 = vsub.s32 %v327_v59, %v330_v11  ;;  %vm2330_vm3 = vcmp.le.f32.partialorder %v267_v36, 0.7853982  ;;  %vm404_vm4 = vcmp.lt.s32.totalorder %v2295_v42, 2  ;;  %vm405_vm5 = vcmp.lt.s32.totalorder %v2295_v42, 3 }
  0x5b   :  { %v1865_v41 = vadd.s32 4294967294, %v231_v14  ;;  %v408_v40 = vsel %vm406_vm1, %v396_v33, 2102212464  ;;  %v407_v60 = vsel %vm403_vm0, %v387_v35, %v390_v37  ;;  %v411_v39 = vsel %vm403_vm0, %v390_v37, %v393_v38 }
  0x5c   :  { %v333_v43 = vsub.s32 0, %v2325_v45  ;;  %v412_v47 = vsel %vm406_vm1, %v399_v44, 920167782  ;;  %v409_v51 = vsel %vm405_vm5, %v393_v38, %v408_v40  ;;  %v415_v53 = vsel %vm403_vm0, %v393_v38, %v396_v33 }
  0x5d   :  { %vm1866_vm2 = vcmp.lt.s32.totalorder %v1865_v41, 0  ;;  %v413_v52 = vsel %vm405_vm5, %v396_v33, %v412_v47  ;;  %v416_v57 = vsel %vm406_vm1, %v402_v12, 1326507024  ;;  %v252_v14 = vsel %vm2314_vm14, 0, %v250_v56 }
  0x5e   :  { %v234_v59 = vsel %vm1866_vm2, 0, %v1865_v41  ;;  %v1868_v49 = vmin.u32 %v333_v43, %v2325_v45  ;;  %v323_v11 = vadd.s32 %v2270_v4, %v2276_v13  ;;  %v354_v37 = vsel %vm269_vm15, %v353_v10, %v329_v58 }
  0x5f   :  { %v235_v36 = vsub.s32 32, %v234_v59  ;;  %v236_v55 = vshll.u32 %v2288_v62, %v234_v59  ;;  %v239_v46 = vsub.s32 4294967266, %v234_v59  ;;  %v414_v62 = vsel %vm404_vm4, %v411_v39, %v413_v52 }
  0x60   :  { %v335_v35 = vclz %v1868_v49  ;;  %v417_v33 = vsel %vm405_vm5, %v399_v44, %v416_v57  ;;  %v2370_v56 = vmul.u32.u64.low %v2297_v63, %v414_v62  ;;  %v2371_v59 = vmul.u32.u64.high %v2297_v63, %v414_v62, %v2370_v56 }
  0x61   :  { %v237_v54 = vshrl.u32 %v219_v8, %v235_v36  ;;  %v240_v0 = vadd.s32 127, %v239_v46  ;;  %v410_v8 = vsel %vm404_vm4, %v407_v60, %v409_v51  ;;  %v418_v12 = vsel %vm404_vm4, %v415_v53, %v417_v33 }
  0x62   :  { %v1869_v40 = vadd.s32 4294967294, %v335_v35  ;;  %v2375_v58 = vmul.u32.u64.low %v2297_v63, %v418_v12  ;;  %v2376_v10 = vmul.u32.u64.high %v2297_v63, %v418_v12, %v2375_v58  ;;  %v256_v43 = vadd.s32 3, %v252_v14 }
  0x63   :  { %v238_v41 = vor.u32 %v237_v54, %v236_v55  ;;  %v241_v38 = vshll.u32 %v240_v0, 23  ;;  %v356_v44 = vsel %vm2330_vm3, 0, %v354_v37  ;;  %vm486_vm7 = vcmp.gt.s32.totalorder %v485_v16, 0 }
  0x64   :  { %vm1870_vm6 = vcmp.lt.s32.totalorder %v1869_v40, 0  ;;  %v426_v39 = vmul.u32 %v2297_v63, %v410_v8  ;;  %v487_v36 = vsel %vm486_vm7, %v485_v16, 0  ;;  %v429_v49 = vadd.s32 1, %v2371_v59 }
  0x65   :  { %v242_v4 = vor.u32 4788187, %v241_v38  ;;  %v245_v13 = vcvt.s32.f32 %v238_v41  ;;  %v338_v42 = vsel %vm1870_vm6, 0, %v1869_v40  ;;  %vm428_vm8 = vc.u32 %v2376_v10, %v2370_v56 }
  0x66   :  { %v339_v55 = vsub.s32 32, %v338_v42  ;;  %v340_v46 = vshll.u32 %v2325_v45, %v338_v42  ;;  %v343_v47 = vsub.s32 4294967266, %v338_v42  ;;  %v2387_v52 = vshll.u32 %v483_v2, 8 }
  0x67   :  { %v243_v60 = vand.u32 2147483647, %v242_v4  ;;  %v579_v53 = vand.u32 2147483647, %v2165_v21  ;;  %v430_v63 = vsel %vm428_vm8, %v429_v49, %v2371_v59  ;;  %v489_v16 = vand.u32 31, %v487_v36 }
  0x68   :  { %v341_v54 = vshrl.u32 %v323_v11, %v339_v55  ;;  %v344_v0 = vadd.s32 127, %v343_v47  ;;  %v2391_v45 = vand.u32 3, %v256_v43  ;;  %v360_v57 = vadd.s32 3, %v356_v44 }
  0x69   :  { %v246_v51 = vmul.f32 %v245_v13, %v243_v60  ;;  %v431_v14 = vadd.s32 %v430_v63, %v426_v39  ;;  %v2393_v41 = vshrl.u32 %v487_v36, 5  ;;  %v490_v38 = vsub.s32 32, %v489_v16 }
  0x6a   :  { %v342_v35 = vor.u32 %v341_v54, %v340_v46  ;;  %v345_v37 = vshll.u32 %v344_v0, 23  ;;  %v492_v11 = vshll.u32 %v2114_v1, %v489_v16  ;;  %v495_v8 = vshll.u32 %v2115_v3, %v489_v16 }
  0x6b   :  { %v247_v62 = vxor.u32 2147483648, %v246_v51  ;;  %v432_v2 = vadd.s32 536870912, %v431_v14  ;;  %v498_v59 = vshll.u32 %v2116_v5, %v489_v16  ;;  %v493_v13 = vshrl.u32 %v2115_v3, %v490_v38 }
  0x6c   :  { %v346_v40 = vor.u32 4788187, %v345_v37  ;;  %v349_v12 = vcvt.s32.f32 %v342_v35  ;;  %v496_v58 = vshrl.u32 %v2116_v5, %v490_v38  ;;  %v499_v44 = vshrl.u32 %v2117_v7, %v490_v38 }
  0x6d   :  { %v248_v61 = vsel %vm165_vm13, %v247_v62, %v246_v51  ;;  %v433_v4 = vshrl.u32 %v432_v2, 30  ;;  %v501_v60 = vshll.u32 %v2117_v7, %v489_v16  ;;  %vm262_vm9 = vcmp.eq.s32.totalorder %v2391_v45, 2 }
  0x6e   :  { %v251_v33 = vsel %vm2314_vm14, %v2161_v19, %v248_v61  ;;  %v347_v43 = vand.u32 2147483647, %v346_v40  ;;  %v2408_v6 = vand.u32 3, %v360_v57  ;;  %vm373_vm10 = vcmp.lt.s32.totalorder %v2190_v34, 0 }
  0x6f   :  { %2001 = vcosq.f32 %v251_v33  ;;  %v434_v42 = vshll.u32 %v433_v4, 30  ;;  %vm507_vm11 = vcmp.lt.s32.totalorder %v2393_v41, 1  ;;  %vm259_vm12 = vcmp.eq.s32.totalorder %v2391_v45, 0 }
  0x70   :  { %2003 = vsinq.f32 %v251_v33  ;;  %v350_v39 = vmul.f32 %v349_v12, %v347_v43  ;;  %v491_v36 = vshrl.u32 %v2114_v1, %v490_v38  ;;  %v502_v55 = vshrl.u32 %v2118_v9, %v490_v38 }
  0x71   :  { %v504_v46 = vshll.u32 %v2118_v9, %v489_v16  ;;  %vm258_vm13 = vcmp.lt.s32.totalorder %v2391_v45, 2  ;;  %v2417_v47 = vsub.s32 %v431_v14, %v434_v42  ;;  %v494_v49 = vor.u32 %v493_v13, %v492_v11 }
  0x72   :  { %v497_v51 = vor.u32 %v496_v58, %v495_v8  ;;  %v505_v54 = vshrl.u32 %v2119_v17, %v490_v38  ;;  %vm255_vm14 = vweird.f32 %v2161_v19  ;;  %v351_v0 = vxor.u32 2147483648, %v350_v39 }
  0x73   :  { %v500_v63 = vor.u32 %v499_v44, %v498_v59  ;;  %v503_v62 = vor.u32 %v502_v55, %v501_v60  ;;  %vm510_vm0 = vcmp.lt.s32.totalorder %v2393_v41, 4  ;;  %v437_v57 = vsub.s32 0, %v2417_v47 }
  0x74   :  { %v457_v35 = vsub.s32 4, %v433_v4  ;;  %vm509_vm1 = vcmp.lt.s32.totalorder %v2393_v41, 3  ;;  %v582_v16 = vand.u32 2139095040, %v2165_v21  ;;  %v352_v14 = vsel %vm269_vm15, %v351_v0, %v350_v39 }
  0x75   :  { %v506_v37 = vor.u32 %v505_v54, %v504_v46  ;;  %v512_v38 = vsel %vm510_vm0, %v500_v63, 2102212464  ;;  %v516_v61 = vsel %vm510_vm0, %v503_v62, 920167782  ;;  %v355_v2 = vsel %vm2330_vm3, %v2163_v20, %v352_v14 }
  0x76   :  { %v1872_v11 = vmin.u32 %v437_v57, %v2417_v47  ;;  %vm508_vm2 = vcmp.lt.s32.totalorder %v2393_v41, 2  ;;  %v515_v8 = vsel %vm507_vm11, %v494_v49, %v497_v51  ;;  %2005 = vcosq.f32 %v355_v2 }
  0x77   :  { %v511_v33 = vsel %vm507_vm11, %v491_v36, %v494_v49  ;;  %v513_v40 = vsel %vm509_vm1, %v497_v51, %v512_v38  ;;  %v517_v12 = vsel %vm509_vm1, %v500_v63, %v516_v61  ;;  %2007 = vsinq.f32 %v355_v2 }
  0x78   :  { %v427_v15 = vadd.s32 %v2370_v56, %v2376_v10  ;;  %v439_v13 = vclz %v1872_v11  ;;  %v519_v58 = vsel %vm507_vm11, %v497_v51, %v500_v63  ;;  %v458_v60 = vsel %vm373_vm10, %v457_v35, %v433_v4 }
  0x79   :  { %v2002_v59 = vpop.eup %2001  ;;  %v518_v42 = vsel %vm508_vm2, %v515_v8, %v517_v12  ;;  %v520_v39 = vsel %vm510_vm0, %v506_v37, 1326507024  ;;  %v514_v56 = vsel %vm508_vm2, %v511_v33, %v513_v40  ;;  %v583_v35 = vshrl.u32 %v582_v16, 23 }
  0x7a   :  { %v2004_v43 = vpop.eup %2003  ;;  %v263_v44 = vxor.u32 2147483648, %v2002_v59  ;;  %v1873_v55 = vadd.s32 4294967294, %v439_v13  ;;  %v521_v10 = vsel %vm509_vm1, %v503_v62, %v520_v39  ;;  %v530_v41 = vmul.u32 %v2387_v52, %v514_v56 }
  0x7b   :  { %v260_v36 = vxor.u32 2147483648, %v2004_v43  ;;  %v522_v4 = vsel %vm508_vm2, %v519_v58, %v521_v10  ;;  %v2463_v49 = vmul.u32.u64.low %v2387_v52, %v518_v42  ;;  %v2464_v51 = vmul.u32.u64.high %v2387_v52, %v518_v42, %v2463_v49 }
  0x7c   :  { %v264_v46 = vsel %vm262_vm9, %v263_v44, %v2004_v43  ;;  %vm1874_vm15 = vcmp.lt.s32.totalorder %v1873_v55, 0  ;;  %v2470_v0 = vmul.u32.u64.low %v2387_v52, %v522_v4  ;;  %v2471_v63 = vmul.u32.u64.high %v2387_v52, %v522_v4, %v2470_v0 }
  0x7d   :  { %v261_v54 = vsel %vm259_vm12, %v2002_v59, %v260_v36  ;;  %v442_v57 = vsel %vm1874_vm15, 0, %v1873_v55  ;;  %vm363_vm3 = vcmp.eq.s32.totalorder %v2408_v6, 0  ;;  %vm2482_vm4 = vcmp.le.f32.partialorder %v371_v48, 0.7853982 }
  0x7e   :  { %v265_v62 = vsel %vm258_vm13, %v261_v54, %v264_v46  ;;  %v443_v37 = vsub.s32 32, %v442_v57  ;;  %v444_v38 = vshll.u32 %v2417_v47, %v442_v57  ;;  %v447_v61 = vsub.s32 4294967266, %v442_v57 }
  0x7f   :  { %v266_v14 = vsel %vm255_vm14, nan, %v265_v62  ;;  %v533_v45 = vadd.s32 1, %v2464_v51  ;;  %v1879_v11 = vadd.s32 4294967169, %v583_v35  ;;  %vm366_vm5 = vcmp.eq.s32.totalorder %v2408_v6, 2 }
  0x80   :  { %1827 = vst [vmem:[#allocation5] sm:$0xff] %v266_v14  ;;  %v445_v19 = vshrl.u32 %v427_v15, %v443_v37  ;;  %v448_v52 = vadd.s32 127, %v447_v61  ;;  %vm532_vm6 = vc.u32 %v2471_v63, %v2463_v49  ;;  %v2006_v47 = vpop.eup %2005  ;;  %v460_v16 = vsel %vm2482_vm4, 0, %v458_v60 }
  0x81   :  { %v534_v48 = vsel %vm532_vm6, %v533_v45, %v2464_v51  ;;  %v586_v8 = vand.u32 8388607, %v579_v53  ;;  %v589_v33 = vadd.s32 1, %v1879_v11  ;;  %v2008_v40 = vpop.eup %2007  ;;  %v367_v12 = vxor.u32 2147483648, %v2006_v47 }
  0x82   :  { %v446_v59 = vor.u32 %v445_v19, %v444_v38  ;;  %v449_v13 = vshll.u32 %v448_v52, 23  ;;  %v535_v58 = vadd.s32 %v534_v48, %v530_v41  ;;  %vm359_vm7 = vweird.f32 %v2163_v20 }
  0x83   :  { %vm362_vm8 = vcmp.lt.s32.totalorder %v2408_v6, 2  ;;  %v364_v15 = vxor.u32 2147483648, %v2008_v40  ;;  %vm590_vm9 = vcmp.gt.s32.totalorder %v589_v33, 0  ;;  %v368_v43 = vsel %vm366_vm5, %v367_v12, %v2008_v40 }
  0x84   :  { %v450_v44 = vor.u32 4788187, %v449_v13  ;;  %v453_v60 = vcvt.s32.f32 %v446_v59  ;;  %v536_v42 = vadd.s32 536870912, %v535_v58  ;;  %v464_v36 = vadd.s32 3, %v460_v16 }
  0x85   :  { %v365_v39 = vsel %vm363_vm3, %v2006_v47, %v364_v15  ;;  %v587_v55 = vor.u32 8388608, %v586_v8  ;;  %v591_v56 = vsel %vm590_vm9, %v589_v33, 0  ;;  %v686_v54 = vand.u32 2139095040, %v2167_v22 }
  0x86   :  { %v369_v10 = vsel %vm362_vm8, %v365_v39, %v368_v43  ;;  %v451_v46 = vand.u32 2147483647, %v450_v44  ;;  %v2501_v4 = vshrl.u32 %v536_v42, 30  ;;  %v593_v51 = vand.u32 31, %v591_v56 }
  0x87   :  { %v370_v20 = vsel %vm359_vm7, nan, %v369_v10  ;;  %v592_v57 = vshrl.u32 %v591_v56, 5  ;;  %v2505_v41 = vand.u32 3, %v464_v36  ;;  %v2508_v14 = vshll.u32 %v587_v55, 8 }
  0x88   :  { %v454_v0 = vmul.f32 %v453_v60, %v451_v46  ;;  %v538_v62 = vshll.u32 %v2501_v4, 30  ;;  %1828 = vst [vmem:[#allocation5 + $0x8] sm:$0xff] %v370_v20  ;;  %v594_v6 = vsub.s32 32, %v593_v51  ;;  %v596_v35 = vshll.u32 %v2114_v1, %v593_v51 }
  0x89   :  { %v599_v61 = vshll.u32 %v2115_v3, %v593_v51  ;;  %v602_v45 = vshll.u32 %v2116_v5, %v593_v51  ;;  %v605_v52 = vshll.u32 %v2117_v7, %v593_v51  ;;  %v687_v47 = vshrl.u32 %v686_v54, 23 }
  0x8a   :  { %v455_v37 = vxor.u32 2147483648, %v454_v0  ;;  %v2510_v38 = vsub.s32 %v535_v58, %v538_v62  ;;  %v597_v11 = vshrl.u32 %v2115_v3, %v594_v6  ;;  %v600_v19 = vshrl.u32 %v2116_v5, %v594_v6 }
  0x8b   :  { %v603_v8 = vshrl.u32 %v2117_v7, %v594_v6  ;;  %vm611_vm11 = vcmp.lt.s32.totalorder %v592_v57, 1  ;;  %v595_v40 = vshrl.u32 %v2114_v1, %v594_v6  ;;  %v606_v59 = vshrl.u32 %v2118_v9, %v594_v6 }
  0x8c   :  { %v456_v16 = vsel %vm373_vm10, %v455_v37, %v454_v0  ;;  %v541_v48 = vsub.s32 0, %v2510_v38  ;;  %v598_v12 = vor.u32 %v597_v11, %v596_v35  ;;  %v601_v58 = vor.u32 %v600_v19, %v599_v61 }
  0x8d   :  { %v459_v33 = vsel %vm2482_vm4, %v2190_v34, %v456_v16  ;;  %v604_v15 = vor.u32 %v603_v8, %v602_v45  ;;  %v607_v43 = vor.u32 %v606_v59, %v605_v52  ;;  %v608_v44 = vshll.u32 %v2118_v9, %v593_v51 }
  0x8e   :  { %2009 = vcosq.f32 %v459_v33  ;;  %v1876_v13 = vmin.u32 %v541_v48, %v2510_v38  ;;  %v609_v60 = vshrl.u32 %v2119_v17, %v594_v6  ;;  %vm477_vm10 = vcmp.lt.s32.totalorder %v2201_v50, 0 }
  0x8f   :  { %2011 = vsinq.f32 %v459_v33  ;;  %v531_v2 = vadd.s32 %v2463_v49, %v2471_v63  ;;  %v683_v39 = vand.u32 2147483647, %v2167_v22  ;;  %v1883_v36 = vadd.s32 4294967169, %v687_v47 }
  0x90   :  { %v543_v42 = vclz %v1876_v13  ;;  %vm467_vm12 = vcmp.eq.s32.totalorder %v2505_v41, 0  ;;  %v610_v55 = vor.u32 %v609_v60, %v608_v44  ;;  %vm612_vm13 = vcmp.lt.s32.totalorder %v592_v57, 2 }
  0x91   :  { %vm613_vm14 = vcmp.lt.s32.totalorder %v592_v57, 3  ;;  %vm614_vm0 = vcmp.lt.s32.totalorder %v592_v57, 4  ;;  %vm466_vm1 = vcmp.lt.s32.totalorder %v2505_v41, 2  ;;  %v615_v10 = vsel %vm611_vm11, %v595_v40, %v598_v12 }
  0x92   :  { %v1877_v56 = vadd.s32 4294967294, %v543_v42  ;;  %v616_v46 = vsel %vm614_vm0, %v604_v15, 2102212464  ;;  %v619_v20 = vsel %vm611_vm11, %v598_v12, %v601_v58  ;;  %vm463_vm2 = vweird.f32 %v2190_v34 }
  0x93   :  { %v617_v49 = vsel %vm613_vm14, %v601_v58, %v616_v46  ;;  %v620_v63 = vsel %vm614_vm0, %v607_v43, 920167782  ;;  %v623_v51 = vsel %vm611_vm11, %v601_v58, %v604_v15  ;;  %v624_v54 = vsel %vm614_vm0, %v610_v55, 1326507024 }
  0x94   :  { %vm1878_vm15 = vcmp.lt.s32.totalorder %v1877_v56, 0  ;;  %v561_v0 = vsub.s32 4, %v2501_v4  ;;  %v621_v62 = vsel %vm613_vm14, %v604_v15, %v620_v63  ;;  %v625_v6 = vsel %vm613_vm14, %v607_v43, %v624_v54 }
  0x95   :  { %v546_v35 = vsel %vm1878_vm15, 0, %v1877_v56  ;;  %v618_v37 = vsel %vm612_vm13, %v615_v10, %v617_v49  ;;  %v622_v61 = vsel %vm612_vm13, %v619_v20, %v621_v62  ;;  %v626_v45 = vsel %vm612_vm13, %v623_v51, %v625_v6 }
  0x96   :  { %v547_v11 = vsub.s32 32, %v546_v35  ;;  %v548_v19 = vshll.u32 %v2510_v38, %v546_v35  ;;  %v551_v52 = vsub.s32 4294967266, %v546_v35  ;;  %v693_v47 = vadd.s32 1, %v1883_v36 }
  0x97   :  { %v2545_v16 = vmul.u32.u64.low %v2508_v14, %v626_v45  ;;  %v2546_v48 = vmul.u32.u64.high %v2508_v14, %v626_v45, %v2545_v16  ;;  %v2549_v8 = vmul.u32.u64.low %v2508_v14, %v622_v61  ;;  %v2550_v33 = vmul.u32.u64.high %v2508_v14, %v622_v61, %v2549_v8 }
  0x98   :  { %v2010_v40 = vpop.eup %2009  ;;  %vm470_vm3 = vcmp.eq.s32.totalorder %v2505_v41, 2  ;;  %v549_v12 = vshrl.u32 %v531_v2, %v547_v11  ;;  %v552_v57 = vadd.s32 127, %v551_v52  ;;  %vm694_vm4 = vcmp.gt.s32.totalorder %v693_v47, 0 }
  0x99   :  { %v2012_v59 = vpop.eup %2011  ;;  %v471_v13 = vxor.u32 2147483648, %v2010_v40  ;;  %v562_v38 = vsel %vm477_vm10, %v561_v0, %v2501_v4  ;;  %v690_v58 = vand.u32 8388607, %v683_v39  ;;  %v695_v15 = vsel %vm694_vm4, %v693_v47, 0 }
  0x9a   :  { %v468_v43 = vxor.u32 2147483648, %v2012_v59  ;;  %v550_v44 = vor.u32 %v549_v12, %v548_v19  ;;  %v553_v60 = vshll.u32 %v552_v57, 23  ;;  %v634_v42 = vmul.u32 %v2508_v14, %v618_v37 }
  0x9b   :  { %v472_v36 = vsel %vm470_vm3, %v471_v13, %v2012_v59  ;;  %vm2562_vm5 = vcmp.le.f32.partialorder %v475_v18, 0.7853982  ;;  %vm636_vm6 = vc.u32 %v2546_v48, %v2549_v8  ;;  %v637_v4 = vadd.s32 1, %v2550_v33 }
  0x9c   :  { %v469_v55 = vsel %vm467_vm12, %v2010_v40, %v468_v43  ;;  %v554_v56 = vor.u32 4788187, %v553_v60  ;;  %v557_v10 = vcvt.s32.f32 %v550_v44  ;;  %v697_v46 = vand.u32 31, %v695_v15 }
  0x9d   :  { %v473_v14 = vsel %vm466_vm1, %v469_v55, %v472_v36  ;;  %v564_v18 = vsel %vm2562_vm5, 0, %v562_v38  ;;  %v638_v20 = vsel %vm636_vm6, %v637_v4, %v2550_v33  ;;  %v691_v49 = vor.u32 8388608, %v690_v58 }
  0x9e   :  { %v474_v63 = vsel %vm463_vm2, nan, %v473_v14  ;;  %v555_v51 = vand.u32 2147483647, %v554_v56  ;;  %v639_v54 = vadd.s32 %v638_v20, %v634_v42  ;;  %v698_v0 = vsub.s32 32, %v697_v46 }
  0x9f   :  { %v696_v62 = vshrl.u32 %v695_v15, 5  ;;  %v700_v6 = vshll.u32 %v2114_v1, %v697_v46  ;;  %v703_v35 = vshll.u32 %v2115_v3, %v697_v46  ;;  %v709_v41 = vshll.u32 %v2117_v7, %v697_v46  ;;  %1829 = vst [vmem:[#allocation5 + $0x10] sm:$0xff] %v474_v63 }
  0xa0   :  { %v558_v37 = vmul.f32 %v557_v10, %v555_v51  ;;  %v640_v61 = vadd.s32 536870912, %v639_v54  ;;  %v701_v45 = vshrl.u32 %v2115_v3, %v698_v0  ;;  %v706_v11 = vshll.u32 %v2116_v5, %v697_v46 }
  0xa1   :  { %v704_v34 = vshrl.u32 %v2116_v5, %v698_v0  ;;  %v707_v19 = vshrl.u32 %v2117_v7, %v698_v0  ;;  %v710_v52 = vshrl.u32 %v2118_v9, %v698_v0  ;;  %v712_v47 = vshll.u32 %v2118_v9, %v697_v46 }
  0xa2   :  { %v559_v16 = vxor.u32 2147483648, %v558_v37  ;;  %v641_v33 = vshrl.u32 %v640_v61, 30  ;;  %v702_v40 = vor.u32 %v701_v45, %v700_v6  ;;  %v713_v12 = vshrl.u32 %v2119_v17, %v698_v0 }
  0xa3   :  { %v568_v57 = vadd.s32 3, %v564_v18  ;;  %v705_v59 = vor.u32 %v704_v34, %v703_v35  ;;  %v711_v13 = vor.u32 %v710_v52, %v709_v41  ;;  %vm715_vm7 = vcmp.lt.s32.totalorder %v696_v62, 1 }
  0xa4   :  { %v560_v38 = vsel %vm477_vm10, %v559_v16, %v558_v37  ;;  %v642_v58 = vshll.u32 %v641_v33, 30  ;;  %v708_v15 = vor.u32 %v707_v19, %v706_v11  ;;  %vm716_vm8 = vcmp.lt.s32.totalorder %v696_v62, 2 }
  0xa5   :  { %v563_v43 = vsel %vm2562_vm5, %v2201_v50, %v560_v38  ;;  %v714_v44 = vor.u32 %v713_v12, %v712_v47  ;;  %vm717_vm9 = vcmp.lt.s32.totalorder %v696_v62, 3  ;;  %vm718_vm11 = vcmp.lt.s32.totalorder %v696_v62, 4 }
  0xa6   :  { %2013 = vcosq.f32 %v563_v43  ;;  %v2593_v60 = vsub.s32 %v639_v54, %v642_v58  ;;  %v699_v42 = vshrl.u32 %v2114_v1, %v698_v0  ;;  %v723_v36 = vsel %vm715_vm7, %v702_v40, %v705_v59 }
  0xa7   :  { %2015 = vsinq.f32 %v563_v43  ;;  %v720_v4 = vsel %vm718_vm11, %v708_v15, 2102212464  ;;  %v724_v55 = vsel %vm718_vm11, %v711_v13, 920167782  ;;  %v731_v56 = vshll.u32 %v691_v49, 8 }
  0xa8   :  { %v645_v10 = vsub.s32 0, %v2593_v60  ;;  %v665_v46 = vsub.s32 4, %v641_v33  ;;  %v725_v2 = vsel %vm717_vm9, %v708_v15, %v724_v55  ;;  %v569_v14 = vand.u32 3, %v568_v57 }
  0xa9   :  { %v726_v18 = vsel %vm716_vm8, %v723_v36, %v725_v2  ;;  %v727_v20 = vsel %vm715_vm7, %v705_v59, %v708_v15  ;;  %v728_v63 = vsel %vm718_vm11, %v714_v44, 1326507024  ;;  %v719_v54 = vsel %vm715_vm7, %v699_v42, %v702_v40 }
  0xaa   :  { %v1880_v51 = vmin.u32 %v645_v10, %v2593_v60  ;;  %v721_v0 = vsel %vm717_vm9, %v705_v59, %v720_v4  ;;  %v729_v6 = vsel %vm717_vm9, %v711_v13, %v728_v63  ;;  %vm581_vm10 = vcmp.lt.s32.totalorder %v2165_v21, 0 }
  0xab   :  { %v730_v49 = vsel %vm716_vm8, %v727_v20, %v729_v6  ;;  %v2607_v35 = vmul.u32.u64.low %v731_v56, %v726_v18  ;;  %v2608_v41 = vmul.u32.u64.high %v731_v56, %v726_v18, %v2607_v35  ;;  %v666_v61 = vsel %vm581_vm10, %v665_v46, %v641_v33 }
  0xac   :  { %v647_v37 = vclz %v1880_v51  ;;  %v787_v45 = vand.u32 2147483647, %v2169_v23  ;;  %v722_v11 = vsel %vm716_vm8, %v719_v54, %v721_v0  ;;  %v790_v52 = vand.u32 2139095040, %v2169_v23 }
  0xad   :  { %v2614_v34 = vmul.u32.u64.low %v731_v56, %v730_v49  ;;  %v2615_v19 = vmul.u32.u64.high %v731_v56, %v730_v49, %v2614_v34  ;;  %vm567_vm12 = vweird.f32 %v2201_v50  ;;  %vm570_vm13 = vcmp.lt.s32.totalorder %v569_v14, 2 }
  0xae   :  { %vm2621_vm14 = vcmp.le.f32.partialorder %v579_v53, 0.7853982  ;;  %v1881_v16 = vadd.s32 4294967294, %v647_v37  ;;  %vm571_vm0 = vcmp.eq.s32.totalorder %v569_v14, 0  ;;  %vm574_vm1 = vcmp.eq.s32.totalorder %v569_v14, 2 }
  0xaf   :  { %v741_v62 = vadd.s32 1, %v2608_v41  ;;  %v791_v33 = vshrl.u32 %v790_v52, 23  ;;  %v635_v12 = vadd.s32 %v2549_v8, %v2546_v48  ;;  %v668_v57 = vsel %vm2621_vm14, 0, %v666_v61 }
  0xb0   :  { %v2014_v40 = vpop.eup %2013  ;;  %vm1882_vm2 = vcmp.lt.s32.totalorder %v1881_v16, 0  ;;  %v738_v59 = vmul.u32 %v731_v56, %v722_v11  ;;  %vm740_vm15 = vc.u32 %v2615_v19, %v2607_v35  ;;  %v794_v58 = vand.u32 8388607, %v787_v45 }
  0xb1   :  { %v2016_v13 = vpop.eup %2015  ;;  %v575_v53 = vxor.u32 2147483648, %v2014_v40  ;;  %v650_v38 = vsel %vm1882_vm2, 0, %v1881_v16  ;;  %v742_v8 = vsel %vm740_vm15, %v741_v62, %v2608_v41  ;;  %v1887_v36 = vadd.s32 4294967169, %v791_v33 }
  0xb2   :  { %v572_v15 = vxor.u32 2147483648, %v2016_v13  ;;  %v651_v43 = vsub.s32 32, %v650_v38  ;;  %v652_v44 = vshll.u32 %v2593_v60, %v650_v38  ;;  %v655_v42 = vsub.s32 4294967266, %v650_v38 }
  0xb3   :  { %v576_v48 = vsel %vm574_vm1, %v575_v53, %v2016_v13  ;;  %v894_v4 = vand.u32 2139095040, %v2171_v24  ;;  %v743_v46 = vadd.s32 %v742_v8, %v738_v59  ;;  %v672_v18 = vadd.s32 3, %v668_v57 }
  0xb4   :  { %v573_v55 = vsel %vm571_vm0, %v2014_v40, %v572_v15  ;;  %v653_v56 = vshrl.u32 %v635_v12, %v651_v43  ;;  %v656_v10 = vadd.s32 127, %v655_v42  ;;  %v797_v20 = vadd.s32 1, %v1887_v36 }
  0xb5   :  { %v577_v2 = vsel %vm570_vm13, %v573_v55, %v576_v48  ;;  %v891_v63 = vand.u32 2147483647, %v2171_v24  ;;  %v744_v0 = vadd.s32 536870912, %v743_v46  ;;  %v795_v6 = vor.u32 8388608, %v794_v58 }
  0xb6   :  { %v578_v60 = vsel %vm567_vm12, nan, %v577_v2  ;;  %v654_v51 = vor.u32 %v653_v56, %v652_v44  ;;  %v657_v54 = vshll.u32 %v656_v10, 23  ;;  %vm798_vm3 = vcmp.gt.s32.totalorder %v797_v20, 0 }
  0xb7   :  { %v895_v49 = vshrl.u32 %v894_v4, 23  ;;  %1830 = vst [vmem:[#allocation5 + $0x18] sm:$0xff] %v578_v60  ;;  %v2642_v61 = vshrl.u32 %v744_v0, 30  ;;  %v799_v14 = vsel %vm798_vm3, %v797_v20, 0  ;;  %v2644_v52 = vand.u32 3, %v672_v18 }
  0xb8   :  { %v658_v41 = vor.u32 4788187, %v657_v54  ;;  %v661_v37 = vcvt.s32.f32 %v654_v51  ;;  %v801_v11 = vand.u32 31, %v799_v14  ;;  %v2649_v50 = vand.u32 8388607, %v891_v63 }
  0xb9   :  { %v746_v16 = vshll.u32 %v2642_v61, 30  ;;  %v739_v62 = vadd.s32 %v2607_v35, %v2615_v19  ;;  %v2652_v40 = vshll.u32 %v795_v6, 8  ;;  %v1891_v12 = vadd.s32 4294967169, %v895_v49 }
  0xba   :  { %v659_v34 = vand.u32 2147483647, %v658_v41  ;;  %v802_v33 = vsub.s32 32, %v801_v11  ;;  %v804_v13 = vshll.u32 %v2114_v1, %v801_v11  ;;  %v807_v53 = vshll.u32 %v2115_v3, %v801_v11 }
  0xbb   :  { %v2654_v59 = vsub.s32 %v743_v46, %v746_v16  ;;  %v810_v15 = vshll.u32 %v2116_v5, %v801_v11  ;;  %v813_v43 = vshll.u32 %v2117_v7, %v801_v11  ;;  %v800_v44 = vshrl.u32 %v799_v14, 5 }
  0xbc   :  { %v662_v57 = vmul.f32 %v661_v37, %v659_v34  ;;  %v805_v38 = vshrl.u32 %v2115_v3, %v802_v33  ;;  %v808_v58 = vshrl.u32 %v2116_v5, %v802_v33  ;;  %v811_v42 = vshrl.u32 %v2117_v7, %v802_v33 }
  0xbd   :  { %v749_v19 = vsub.s32 0, %v2654_v59  ;;  %v803_v48 = vshrl.u32 %v2114_v1, %v802_v33  ;;  %v814_v8 = vshrl.u32 %v2118_v9, %v802_v33  ;;  %v816_v36 = vshll.u32 %v2118_v9, %v801_v11 }
  0xbe   :  { %v663_v35 = vxor.u32 2147483648, %v662_v57  ;;  %v899_v4 = vor.u32 8388608, %v2649_v50  ;;  %v806_v10 = vor.u32 %v805_v38, %v804_v13  ;;  %v809_v46 = vor.u32 %v808_v58, %v807_v53 }
  0xbf   :  { %v1884_v56 = vmin.u32 %v749_v19, %v2654_v59  ;;  %v812_v18 = vor.u32 %v811_v42, %v810_v15  ;;  %v815_v20 = vor.u32 %v814_v8, %v813_v43  ;;  %v817_v60 = vshrl.u32 %v2119_v17, %v802_v33 }
  0xc0   :  { %v664_v55 = vsel %vm581_vm10, %v663_v35, %v662_v57  ;;  %vm685_vm4 = vcmp.lt.s32.totalorder %v2167_v22, 0  ;;  %vm819_vm5 = vcmp.lt.s32.totalorder %v800_v44, 1  ;;  %v901_v54 = vadd.s32 1, %v1891_v12 }
  0xc1   :  { %v667_v2 = vsel %vm2621_vm14, %v2165_v21, %v664_v55  ;;  %v751_v51 = vclz %v1884_v56  ;;  %v769_v0 = vsub.s32 4, %v2642_v61  ;;  %v818_v6 = vor.u32 %v817_v60, %v816_v36 }
  0xc2   :  { %2017 = vcosq.f32 %v667_v2  ;;  %vm820_vm6 = vcmp.lt.s32.totalorder %v800_v44, 2  ;;  %vm821_vm7 = vcmp.lt.s32.totalorder %v800_v44, 3  ;;  %vm822_vm8 = vcmp.lt.s32.totalorder %v800_v44, 4 }
  0xc3   :  { %2019 = vsinq.f32 %v667_v2  ;;  %v1885_v49 = vadd.s32 4294967294, %v751_v51  ;;  %v823_v47 = vsel %vm819_vm5, %v803_v48, %v806_v10  ;;  %v824_v41 = vsel %vm822_vm8, %v812_v18, 2102212464 }
  0xc4   :  { %v827_v37 = vsel %vm819_vm5, %v806_v10, %v809_v46  ;;  %v828_v14 = vsel %vm822_vm8, %v815_v20, 920167782  ;;  %v831_v11 = vsel %vm819_vm5, %v809_v46, %v812_v18  ;;  %vm2679_vm9 = vcmp.le.f32.partialorder %v683_v39, 0.7853982 }
  0xc5   :  { %vm1886_vm11 = vcmp.lt.s32.totalorder %v1885_v49, 0  ;;  %v825_v16 = vsel %vm821_vm7, %v809_v46, %v824_v41  ;;  %v829_v50 = vsel %vm821_vm7, %v812_v18, %v828_v14  ;;  %v832_v33 = vsel %vm822_vm8, %v818_v6, 1326507024 }
  0xc6   :  { %vm671_vm10 = vweird.f32 %v2165_v21  ;;  %v754_v12 = vsel %vm1886_vm11, 0, %v1885_v49  ;;  %v826_v57 = vsel %vm820_vm6, %v823_v47, %v825_v16  ;;  %v830_v13 = vsel %vm820_vm6, %v827_v37, %v829_v50 }
  0xc7   :  { %v833_v53 = vsel %vm821_vm7, %v815_v20, %v832_v33  ;;  %v755_v38 = vsub.s32 32, %v754_v12  ;;  %v756_v39 = vshll.u32 %v2654_v59, %v754_v12  ;;  %v759_v58 = vsub.s32 4294967266, %v754_v12 }
  0xc8   :  { %v834_v15 = vsel %vm820_vm6, %v831_v11, %v833_v53  ;;  %v2696_v19 = vmul.u32.u64.low %v2652_v40, %v830_v13  ;;  %v2697_v42 = vmul.u32.u64.high %v2652_v40, %v830_v13, %v2696_v19  ;;  %vm674_vm12 = vcmp.lt.s32.totalorder %v2644_v52, 2 }
  0xc9   :  { %v2692_v43 = vmul.u32.u64.low %v2652_v40, %v834_v15  ;;  %v2693_v35 = vmul.u32.u64.high %v2652_v40, %v834_v15, %v2692_v43  ;;  %v757_v48 = vshrl.u32 %v739_v62, %v755_v38  ;;  %v760_v8 = vadd.s32 127, %v759_v58 }
  0xca   :  { %vm902_vm13 = vcmp.gt.s32.totalorder %v901_v54, 0  ;;  %vm675_vm14 = vcmp.eq.s32.totalorder %v2644_v52, 0  ;;  %vm678_vm0 = vcmp.eq.s32.totalorder %v2644_v52, 2  ;;  %v770_v59 = vsel %vm685_vm4, %v769_v0, %v2642_v61 }
  0xcb   :  { %v903_v44 = vsel %vm902_vm13, %v901_v54, 0  ;;  %v758_v55 = vor.u32 %v757_v48, %v756_v39  ;;  %v761_v56 = vshll.u32 %v760_v8, 23  ;;  %v842_v10 = vmul.u32 %v2652_v40, %v826_v57 }
  0xcc   :  { %v2018_v36 = vpop.eup %2017  ;;  %v905_v46 = vand.u32 31, %v903_v44  ;;  %vm844_vm1 = vc.u32 %v2693_v35, %v2696_v19  ;;  %v845_v62 = vadd.s32 1, %v2697_v42  ;;  %v2710_v20 = vshll.u32 %v899_v4, 8 }
  0xcd   :  { %v2020_v2 = vpop.eup %2019  ;;  %v679_v18 = vxor.u32 2147483648, %v2018_v36  ;;  %v762_v51 = vor.u32 4788187, %v761_v56  ;;  %v765_v6 = vcvt.s32.f32 %v758_v55  ;;  %v772_v40 = vsel %vm2679_vm9, 0, %v770_v59 }
  0xce   :  { %v676_v60 = vxor.u32 2147483648, %v2020_v2  ;;  %v906_v61 = vsub.s32 32, %v905_v46  ;;  %v846_v0 = vsel %vm844_vm1, %v845_v62, %v2697_v42  ;;  %v995_v49 = vand.u32 2147483647, %v2173_v25 }
  0xcf   :  { %v680_v54 = vsel %vm678_vm0, %v679_v18, %v2020_v2  ;;  %v763_v41 = vand.u32 2147483647, %v762_v51  ;;  %v847_v4 = vadd.s32 %v846_v0, %v842_v10  ;;  %v908_v37 = vshll.u32 %v2114_v1, %v905_v46 }
  0xd0   :  { %v677_v47 = vsel %vm675_vm14, %v2018_v36, %v676_v60  ;;  %v909_v11 = vshrl.u32 %v2115_v3, %v906_v61  ;;  %v911_v16 = vshll.u32 %v2115_v3, %v905_v46  ;;  %v912_v50 = vshrl.u32 %v2116_v5, %v906_v61 }
  0xd1   :  { %v681_v14 = vsel %vm674_vm12, %v677_v47, %v680_v54  ;;  %v766_v12 = vmul.f32 %v765_v6, %v763_v41  ;;  %v848_v57 = vadd.s32 536870912, %v847_v4  ;;  %v904_v13 = vshrl.u32 %v903_v44, 5 }
  0xd2   :  { %v682_v33 = vsel %vm671_vm10, nan, %v681_v14  ;;  %v914_v53 = vshll.u32 %v2116_v5, %v905_v46  ;;  %v915_v38 = vshrl.u32 %v2117_v7, %v906_v61  ;;  %v917_v39 = vshll.u32 %v2117_v7, %v905_v46 }
  0xd3   :  { %v918_v52 = vshrl.u32 %v2118_v9, %v906_v61  ;;  %1831 = vst [vmem:[#allocation5 + $0x20] sm:$0xff] %v682_v33  ;;  %v767_v58 = vxor.u32 2147483648, %v766_v12  ;;  %v776_v15 = vadd.s32 3, %v772_v40  ;;  %v849_v43 = vshrl.u32 %v848_v57, 30 }
  0xd4   :  { %v920_v42 = vshll.u32 %v2118_v9, %v905_v46  ;;  %vm789_vm2 = vcmp.lt.s32.totalorder %v2169_v23, 0  ;;  %v907_v21 = vshrl.u32 %v2114_v1, %v906_v61  ;;  %v910_v48 = vor.u32 %v909_v11, %v908_v37 }
  0xd5   :  { %v913_v8 = vor.u32 %v912_v50, %v911_v16  ;;  %v921_v59 = vshrl.u32 %v2119_v17, %v906_v61  ;;  %v768_v44 = vsel %vm685_vm4, %v767_v58, %v766_v12  ;;  %v850_v36 = vshll.u32 %v849_v43, 30 }
  0xd6   :  { %v919_v55 = vor.u32 %v918_v52, %v917_v39  ;;  %vm923_vm15 = vcmp.lt.s32.totalorder %v904_v13, 1  ;;  %v771_v56 = vsel %vm2679_vm9, %v2167_v22, %v768_v44  ;;  %v916_v10 = vor.u32 %v915_v38, %v914_v53 }
  0xd7   :  { %v922_v46 = vor.u32 %v921_v59, %v920_v42  ;;  %vm926_vm3 = vcmp.lt.s32.totalorder %v904_v13, 4  ;;  %2021 = vcosq.f32 %v771_v56  ;;  %v2741_v2 = vsub.s32 %v847_v4, %v850_v36 }
  0xd8   :  { %vm925_vm5 = vcmp.lt.s32.totalorder %v904_v13, 3  ;;  %v998_v18 = vand.u32 2139095040, %v2173_v25  ;;  %2023 = vsinq.f32 %v771_v56  ;;  %vm924_vm6 = vcmp.lt.s32.totalorder %v904_v13, 2 }
  0xd9   :  { %v928_v62 = vsel %vm926_vm3, %v916_v10, 2102212464  ;;  %v931_v60 = vsel %vm923_vm15, %v910_v48, %v913_v8  ;;  %v777_v51 = vand.u32 3, %v776_v15  ;;  %v853_v6 = vsub.s32 0, %v2741_v2 }
  0xda   :  { %v873_v34 = vsub.s32 4, %v849_v43  ;;  %v932_v61 = vsel %vm926_vm3, %v919_v55, 920167782  ;;  %v927_v54 = vsel %vm923_vm15, %v907_v21, %v910_v48  ;;  %v935_v0 = vsel %vm923_vm15, %v913_v8, %v916_v10 }
  0xdb   :  { %v933_v40 = vsel %vm925_vm5, %v916_v10, %v932_v61  ;;  %v936_v47 = vsel %vm926_vm3, %v922_v46, 1326507024  ;;  %v1888_v41 = vmin.u32 %v853_v6, %v2741_v2  ;;  %v929_v4 = vsel %vm925_vm5, %v913_v8, %v928_v62 }
  0xdc   :  { %v934_v37 = vsel %vm924_vm6, %v931_v60, %v933_v40  ;;  %v937_v14 = vsel %vm925_vm5, %v919_v55, %v936_v47  ;;  %v999_v33 = vshrl.u32 %v998_v18, 23  ;;  %vm775_vm4 = vweird.f32 %v2167_v22 }
  0xdd   :  { %v938_v11 = vsel %vm924_vm6, %v935_v0, %v937_v14  ;;  %v2758_v16 = vmul.u32.u64.low %v2710_v20, %v934_v37  ;;  %v2759_v50 = vmul.u32.u64.high %v2710_v20, %v934_v37, %v2758_v16  ;;  %vm2765_vm7 = vcmp.le.f32.partialorder %v787_v45, 0.7853982 }
  0xde   :  { %v855_v57 = vclz %v1888_v41  ;;  %v874_v53 = vsel %vm789_vm2, %v873_v34, %v849_v43  ;;  %v930_v38 = vsel %vm924_vm6, %v927_v54, %v929_v4  ;;  %v1895_v58 = vadd.s32 4294967169, %v999_v33 }
  0xdf   :  { %v2773_v39 = vmul.u32.u64.low %v2710_v20, %v938_v11  ;;  %v2774_v52 = vmul.u32.u64.high %v2710_v20, %v938_v11, %v2773_v39  ;;  %vm778_vm8 = vcmp.lt.s32.totalorder %v777_v51, 2  ;;  %vm779_vm9 = vcmp.eq.s32.totalorder %v777_v51, 0 }
  0xe0   :  { %v1889_v15 = vadd.s32 4294967294, %v855_v57  ;;  %v1102_v42 = vand.u32 2139095040, %v2175_v26  ;;  %vm782_vm11 = vcmp.eq.s32.totalorder %v777_v51, 2  ;;  %v949_v45 = vadd.s32 1, %v2759_v50 }
  0xe1   :  { %v1002_v21 = vand.u32 8388607, %v995_v49  ;;  %v1005_v48 = vadd.s32 1, %v1895_v58  ;;  %v2022_v43 = vpop.eup %2021  ;;  %v843_v13 = vadd.s32 %v2696_v19, %v2693_v35  ;;  %v876_v8 = vsel %vm2765_vm7, 0, %v874_v53 }
  0xe2   :  { %vm1890_vm10 = vcmp.lt.s32.totalorder %v1889_v15, 0  ;;  %v946_v59 = vmul.u32 %v2710_v20, %v930_v38  ;;  %v2024_v44 = vpop.eup %2023  ;;  %v783_v36 = vxor.u32 2147483648, %v2022_v43  ;;  %vm948_vm12 = vc.u32 %v2774_v52, %v2758_v16 }
  0xe3   :  { %v858_v55 = vsel %vm1890_vm10, 0, %v1889_v15  ;;  %v1103_v56 = vshrl.u32 %v1102_v42, 23  ;;  %v780_v10 = vxor.u32 2147483648, %v2024_v44  ;;  %v880_v19 = vadd.s32 3, %v876_v8 }
  0xe4   :  { %v859_v46 = vsub.s32 32, %v858_v55  ;;  %v860_v18 = vshll.u32 %v2741_v2, %v858_v55  ;;  %v863_v62 = vsub.s32 4294967266, %v858_v55  ;;  %v784_v35 = vsel %vm782_vm11, %v783_v36, %v2024_v44 }
  0xe5   :  { %v950_v60 = vsel %vm948_vm12, %v949_v45, %v2759_v50  ;;  %vm1006_vm13 = vcmp.gt.s32.totalorder %v1005_v48, 0  ;;  %v781_v20 = vsel %vm779_vm9, %v2022_v43, %v780_v10  ;;  %v1099_v0 = vand.u32 2147483647, %v2175_v26 }
  0xe6   :  { %v861_v6 = vshrl.u32 %v843_v13, %v859_v46  ;;  %v864_v34 = vadd.s32 127, %v863_v62  ;;  %v951_v61 = vadd.s32 %v950_v60, %v946_v59  ;;  %v785_v54 = vsel %vm778_vm8, %v781_v20, %v784_v35 }
  0xe7   :  { %v1007_v40 = vsel %vm1006_vm13, %v1005_v48, 0  ;;  %v1899_v47 = vadd.s32 4294967169, %v1103_v56  ;;  %v786_v2 = vsel %vm775_vm4, nan, %v785_v54  ;;  %v2795_v14 = vand.u32 3, %v880_v19 }
  0xe8   :  { %v862_v41 = vor.u32 %v861_v6, %v860_v18  ;;  %v865_v4 = vshll.u32 %v864_v34, 23  ;;  %v952_v37 = vadd.s32 536870912, %v951_v61  ;;  %v1009_v11 = vand.u32 31, %v1007_v40  ;;  %1832 = vst [vmem:[#allocation5 + $0x28] sm:$0xff] %v786_v2 }
  0xe9   :  { %v1003_v51 = vor.u32 8388608, %v1002_v21  ;;  %v2799_v53 = vshrl.u32 %v1007_v40, 5  ;;  %v2803_v39 = vand.u32 8388607, %v1099_v0  ;;  %v1109_v22 = vadd.s32 1, %v1899_v47 }
  0xea   :  { %v866_v50 = vor.u32 4788187, %v865_v4  ;;  %v869_v33 = vcvt.s32.f32 %v862_v41  ;;  %v2797_v57 = vshrl.u32 %v952_v37, 30  ;;  %v1010_v38 = vsub.s32 32, %v1009_v11 }
  0xeb   :  { %v1012_v42 = vshll.u32 %v2114_v1, %v1009_v11  ;;  %v1015_v45 = vshll.u32 %v2115_v3, %v1009_v11  ;;  %v1018_v21 = vshll.u32 %v2116_v5, %v1009_v11  ;;  %v1021_v44 = vshll.u32 %v2117_v7, %v1009_v11 }
  0xec   :  { %v867_v58 = vand.u32 2147483647, %v866_v50  ;;  %v954_v15 = vshll.u32 %v2797_v57, 30  ;;  %v1013_v48 = vshrl.u32 %v2115_v3, %v1010_v38  ;;  %v1016_v43 = vshrl.u32 %v2116_v5, %v1010_v38 }
  0xed   :  { %v1019_v13 = vshrl.u32 %v2117_v7, %v1010_v38  ;;  %v1022_v36 = vshrl.u32 %v2118_v9, %v1010_v38  ;;  %v947_v55 = vadd.s32 %v2758_v16, %v2774_v52  ;;  %v2818_v56 = vshll.u32 %v1003_v51, 8 }
  0xee   :  { %v870_v8 = vmul.f32 %v869_v33, %v867_v58  ;;  %v2812_v59 = vsub.s32 %v951_v61, %v954_v15  ;;  %v1107_v10 = vor.u32 8388608, %v2803_v39  ;;  %vm1110_vm14 = vcmp.gt.s32.totalorder %v1109_v22, 0 }
  0xef   :  { %v1011_v62 = vshrl.u32 %v2114_v1, %v1010_v38  ;;  %v1014_v35 = vor.u32 %v1013_v48, %v1012_v42  ;;  %v1017_v19 = vor.u32 %v1016_v43, %v1015_v45  ;;  %v1020_v60 = vor.u32 %v1019_v13, %v1018_v21 }
  0xf0   :  { %v871_v46 = vxor.u32 2147483648, %v870_v8  ;;  %v957_v18 = vsub.s32 0, %v2812_v59  ;;  %v1024_v20 = vshll.u32 %v2118_v9, %v1009_v11  ;;  %v1025_v6 = vshrl.u32 %v2119_v17, %v1010_v38 }
  0xf1   :  { %vm893_vm0 = vcmp.lt.s32.totalorder %v2171_v24, 0  ;;  %v1023_v34 = vor.u32 %v1022_v36, %v1021_v44  ;;  %vm1027_vm1 = vcmp.lt.s32.totalorder %v2799_v53, 1  ;;  %vm1030_vm15 = vcmp.lt.s32.totalorder %v2799_v53, 4 }
  0xf2   :  { %v872_v16 = vsel %vm789_vm2, %v871_v46, %v870_v8  ;;  %v1892_v52 = vmin.u32 %v957_v18, %v2812_v59  ;;  %v1026_v54 = vor.u32 %v1025_v6, %v1024_v20  ;;  %v1111_v40 = vsel %vm1110_vm14, %v1109_v22, 0 }
  0xf3   :  { %v875_v61 = vsel %vm2765_vm7, %v2169_v23, %v872_v16  ;;  %vm1029_vm2 = vcmp.lt.s32.totalorder %v2799_v53, 3  ;;  %v1031_v2 = vsel %vm1027_vm1, %v1011_v62, %v1014_v35  ;;  %vm1028_vm3 = vcmp.lt.s32.totalorder %v2799_v53, 2 }
  0xf4   :  { %2025 = vcosq.f32 %v875_v61  ;;  %v959_v47 = vclz %v1892_v52  ;;  %v1032_v41 = vsel %vm1030_vm15, %v1020_v60, 2102212464  ;;  %v1035_v12 = vsel %vm1027_vm1, %v1014_v35, %v1017_v19 }
  0xf5   :  { %2027 = vsinq.f32 %v875_v61  ;;  %vm886_vm5 = vcmp.eq.s32.totalorder %v2795_v14, 2  ;;  %v1033_v37 = vsel %vm1029_vm2, %v1017_v19, %v1032_v41  ;;  %v1036_v11 = vsel %vm1030_vm15, %v1023_v34, 920167782 }
  0xf6   :  { %v1893_v4 = vadd.s32 4294967294, %v959_v47  ;;  %v1039_v50 = vsel %vm1027_vm1, %v1017_v19, %v1020_v60  ;;  %vm883_vm6 = vcmp.eq.s32.totalorder %v2795_v14, 0  ;;  %v977_v33 = vsub.s32 4, %v2797_v57 }
  0xf7   :  { %v1034_v51 = vsel %vm1028_vm3, %v1031_v2, %v1033_v37  ;;  %v1037_v38 = vsel %vm1029_vm2, %v1020_v60, %v1036_v11  ;;  %v1040_v22 = vsel %vm1030_vm15, %v1026_v54, 1326507024  ;;  %vm882_vm4 = vcmp.lt.s32.totalorder %v2795_v14, 2 }
  0xf8   :  { %vm1894_vm7 = vcmp.lt.s32.totalorder %v1893_v4, 0  ;;  %v1038_v58 = vsel %vm1028_vm3, %v1035_v12, %v1037_v38  ;;  %v1041_v15 = vsel %vm1029_vm2, %v1023_v34, %v1040_v22  ;;  %v2863_v42 = vshrl.u32 %v1111_v40, 5 }
  0xf9   :  { %vm879_vm8 = vweird.f32 %v2169_v23  ;;  %v962_v45 = vsel %vm1894_vm7, 0, %v1893_v4  ;;  %v1042_v48 = vsel %vm1028_vm3, %v1039_v50, %v1041_v15  ;;  %v1113_v36 = vand.u32 31, %v1111_v40 }
  0xfa   :  { %v2869_v43 = vmul.u32.u64.low %v2818_v56, %v1038_v58  ;;  %v2870_v21 = vmul.u32.u64.high %v2818_v56, %v1038_v58, %v2869_v43  ;;  %v963_v13 = vsub.s32 32, %v962_v45  ;;  %v964_v8 = vshll.u32 %v2812_v59, %v962_v45 }
  0xfb   :  { %v967_v44 = vsub.s32 4294967266, %v962_v45  ;;  %v2877_v46 = vsel %vm893_vm0, %v977_v33, %v2797_v57  ;;  %v2880_v18 = vmul.u32.u64.low %v2818_v56, %v1042_v48  ;;  %v2881_v62 = vmul.u32.u64.high %v2818_v56, %v1042_v48, %v2880_v18 }
  0xfc   :  { %v1050_v53 = vmul.u32 %v2818_v56, %v1034_v51  ;;  %v965_v35 = vshrl.u32 %v947_v55, %v963_v13  ;;  %v1114_v60 = vsub.s32 32, %v1113_v36  ;;  %vm1131_vm9 = vcmp.lt.s32.totalorder %v2863_v42, 1 }
  0xfd   :  { %v968_v19 = vadd.s32 127, %v967_v44  ;;  %v1053_v59 = vadd.s32 1, %v2870_v21  ;;  %v1116_v20 = vshll.u32 %v2114_v1, %v1113_v36  ;;  %v1119_v6 = vshll.u32 %v2115_v3, %v1113_v36 }
  0xfe   :  { %v1122_v57 = vshll.u32 %v2116_v5, %v1113_v36  ;;  %v2026_v16 = vpop.eup %2025  ;;  %vm2891_vm11 = vcmp.le.f32.partialorder %v891_v63, 0.7853982  ;;  %v966_v55 = vor.u32 %v965_v35, %v964_v8  ;;  %v1117_v34 = vshrl.u32 %v2115_v3, %v1114_v60 }
  0xff   :  { %v969_v56 = vshll.u32 %v968_v19, 23  ;;  %v1125_v61 = vshll.u32 %v2117_v7, %v1113_v36  ;;  %v2028_v54 = vpop.eup %2027  ;;  %v887_v40 = vxor.u32 2147483648, %v2026_v16  ;;  %vm1052_vm10 = vc.u32 %v2881_v62, %v2869_v43 }
 0x100   :  { %v1115_v47 = vshrl.u32 %v2114_v1, %v1114_v60  ;;  %v1120_v2 = vshrl.u32 %v2116_v5, %v1114_v60  ;;  %v884_v41 = vxor.u32 2147483648, %v2028_v54  ;;  %v973_v12 = vcvt.s32.f32 %v966_v55 }
 0x101   :  { %v970_v63 = vor.u32 4788187, %v969_v56  ;;  %v1054_v4 = vsel %vm1052_vm10, %v1053_v59, %v2870_v21  ;;  %v888_v37 = vsel %vm886_vm5, %v887_v40, %v2028_v54  ;;  %v1118_v50 = vor.u32 %v1117_v34, %v1116_v20 }
 0x102   :  { %v1055_v11 = vadd.s32 %v1054_v4, %v1050_v53  ;;  %v1121_v33 = vor.u32 %v1120_v2, %v1119_v6  ;;  %v885_v51 = vsel %vm883_vm6, %v2026_v16, %v884_v41  ;;  %v1123_v22 = vshrl.u32 %v2117_v7, %v1114_v60 }
 0x103   :  { %v971_v38 = vand.u32 2147483647, %v970_v63  ;;  %v1126_v58 = vshrl.u32 %v2118_v9, %v1114_v60  ;;  %v889_v15 = vsel %vm882_vm4, %v885_v51, %v888_v37  ;;  %v1128_v48 = vshll.u32 %v2118_v9, %v1113_v36 }
 0x104   :  { %v1056_v45 = vadd.s32 536870912, %v1055_v11  ;;  %v1129_v21 = vshrl.u32 %v2119_v17, %v1114_v60  ;;  %v890_v13 = vsel %vm879_vm8, nan, %v889_v15  ;;  %v1124_v44 = vor.u32 %v1123_v22, %v1122_v57 }
 0x105   :  { %v974_v8 = vmul.f32 %v973_v12, %v971_v38  ;;  %v1127_v18 = vor.u32 %v1126_v58, %v1125_v61  ;;  %vm1132_vm12 = vcmp.lt.s32.totalorder %v2863_v42, 2  ;;  %vm1133_vm13 = vcmp.lt.s32.totalorder %v2863_v42, 3  ;;  %1833 = vst [vmem:[#allocation5 + $0x30] sm:$0xff] %v890_v13 }
 0x106   :  { %v1057_v53 = vshrl.u32 %v1056_v45, 30  ;;  %vm1134_vm14 = vcmp.lt.s32.totalorder %v2863_v42, 4  ;;  %v1130_v35 = vor.u32 %v1129_v21, %v1128_v48  ;;  %v1139_v23 = vsel %vm1131_vm9, %v1118_v50, %v1121_v33 }
 0x107   :  { %v975_v14 = vxor.u32 2147483648, %v974_v8  ;;  %v1136_v36 = vsel %vm1134_vm14, %v1124_v44, 2102212464  ;;  %v980_v19 = vsel %vm2891_vm11, 0, %v2877_v46  ;;  %v1140_v59 = vsel %vm1134_vm14, %v1127_v18, 920167782 }
 0x108   :  { %v1058_v60 = vshll.u32 %v1057_v53, 30  ;;  %v1147_v20 = vshll.u32 %v1107_v10, 8  ;;  %v1135_v57 = vsel %vm1131_vm9, %v1115_v47, %v1118_v50  ;;  %v1137_v16 = vsel %vm1133_vm13, %v1121_v33, %v1136_v36 }
 0x109   :  { %v976_v6 = vsel %vm893_vm0, %v975_v14, %v974_v8  ;;  %v1141_v55 = vsel %vm1133_vm13, %v1124_v44, %v1140_v59  ;;  %v1143_v10 = vsel %vm1131_vm9, %v1121_v33, %v1124_v44  ;;  %v984_v34 = vadd.s32 3, %v980_v19 }
 0x10a   :  { %v979_v46 = vsel %vm2891_vm11, %v2171_v24, %v976_v6  ;;  %v1059_v56 = vsub.s32 %v1055_v11, %v1058_v60  ;;  %v1142_v39 = vsel %vm1132_vm12, %v1139_v23, %v1141_v55  ;;  %v1081_v61 = vsub.s32 4, %v1057_v53 }
 0x10b   :  { %2029 = vcosq.f32 %v979_v46  ;;  %v1144_v54 = vsel %vm1134_vm14, %v1130_v35, 1326507024  ;;  %v1138_v52 = vsel %vm1132_vm12, %v1135_v57, %v1137_v16  ;;  %vm997_vm0 = vcmp.lt.s32.totalorder %v2173_v25, 0 }
 0x10c   :  { %2031 = vsinq.f32 %v979_v46  ;;  %v1061_v40 = vsub.s32 0, %v1059_v56  ;;  %v1145_v47 = vsel %vm1133_vm13, %v1127_v18, %v1144_v54  ;;  %v985_v11 = vand.u32 3, %v984_v34 }
 0x10d   :  { %v1146_v2 = vsel %vm1132_vm12, %v1143_v10, %v1145_v47  ;;  %v2951_v41 = vmul.u32.u64.low %v1147_v20, %v1142_v39  ;;  %v2952_v63 = vmul.u32.u64.high %v1147_v20, %v1142_v39, %v2951_v41  ;;  %v1082_v50 = vsel %vm997_vm0, %v1081_v61, %v1057_v53 }
 0x10e   :  { %v1896_v12 = vmin.u32 %v1061_v40, %v1059_v56  ;;  %v2955_v4 = vmul.u32.u64.low %v1147_v20, %v1146_v2  ;;  %v2956_v37 = vmul.u32.u64.high %v1147_v20, %v1146_v2, %v2955_v4  ;;  %v1206_v33 = vand.u32 2139095040, %v2177_v27 }
 0x10f   :  { %v1154_v38 = vmul.u32 %v1147_v20, %v1138_v52  ;;  %vm2963_vm1 = vcmp.le.f32.partialorder %v995_v49, 0.7853982  ;;  %v1157_v22 = vadd.s32 1, %v2952_v63  ;;  %vm983_vm15 = vweird.f32 %v2171_v24 }
 0x110   :  { %v1063_v51 = vclz %v1896_v12  ;;  %v1207_v58 = vshrl.u32 %v1206_v33, 23  ;;  %v1084_v45 = vsel %vm2963_vm1, 0, %v1082_v50  ;;  %vm1156_vm2 = vc.u32 %v2956_v37, %v2951_v41 }
 0x111   :  { %vm986_vm3 = vcmp.lt.s32.totalorder %v985_v11, 2  ;;  %v1158_v48 = vsel %vm1156_vm2, %v1157_v22, %v2952_v63  ;;  %v1203_v21 = vand.u32 2147483647, %v2177_v27  ;;  %vm987_vm5 = vcmp.eq.s32.totalorder %v985_v11, 0 }
 0x112   :  { %v1897_v15 = vadd.s32 4294967294, %v1063_v51  ;;  %v1903_v49 = vadd.s32 4294967169, %v1207_v58  ;;  %v1051_v13 = vadd.s32 %v2869_v43, %v2881_v62  ;;  %v1159_v8 = vadd.s32 %v1158_v48, %v1154_v38 }
 0x113   :  { %vm990_vm4 = vcmp.eq.s32.totalorder %v985_v11, 2  ;;  %v1088_v53 = vadd.s32 3, %v1084_v45  ;;  %v1210_v6 = vand.u32 8388607, %v1203_v21  ;;  %v1310_v10 = vand.u32 2139095040, %v2179_v28 }
 0x114   :  { %vm1898_vm6 = vcmp.lt.s32.totalorder %v1897_v15, 0  ;;  %v1213_v14 = vadd.s32 1, %v1903_v49  ;;  %v1160_v20 = vadd.s32 536870912, %v1159_v8  ;;  %v1155_v12 = vadd.s32 %v2951_v41, %v2956_v37 }
 0x115   :  { %v2030_v44 = vpop.eup %2029  ;;  %v1066_v18 = vsel %vm1898_vm6, 0, %v1897_v15  ;;  %v2985_v40 = vand.u32 3, %v1088_v53  ;;  %v1211_v4 = vor.u32 8388608, %v1210_v6  ;;  %v1311_v51 = vshrl.u32 %v1310_v10, 23 }
 0x116   :  { %v2032_v35 = vpop.eup %2031  ;;  %v991_v36 = vxor.u32 2147483648, %v2030_v44  ;;  %v1067_v23 = vsub.s32 32, %v1066_v18  ;;  %v1068_v19 = vshll.u32 %v1059_v56, %v1066_v18  ;;  %v1071_v60 = vsub.s32 4294967266, %v1066_v18 }
 0x117   :  { %v988_v59 = vxor.u32 2147483648, %v2032_v35  ;;  %vm1214_vm7 = vcmp.gt.s32.totalorder %v1213_v14, 0  ;;  %v2979_v46 = vshrl.u32 %v1160_v20, 30  ;;  %v1307_v58 = vand.u32 2147483647, %v2179_v28 }
 0x118   :  { %v992_v57 = vsel %vm990_vm4, %v991_v36, %v2032_v35  ;;  %v1069_v43 = vshrl.u32 %v1051_v13, %v1067_v23  ;;  %v1072_v62 = vadd.s32 127, %v1071_v60  ;;  %v1215_v16 = vsel %vm1214_vm7, %v1213_v14, 0 }
 0x119   :  { %v989_v55 = vsel %vm987_vm5, %v2030_v44, %v988_v59  ;;  %v1217_v39 = vand.u32 31, %v1215_v16  ;;  %v1162_v47 = vshll.u32 %v2979_v46, 30  ;;  %v1216_v45 = vshrl.u32 %v1215_v16, 5 }
 0x11a   :  { %v993_v56 = vsel %vm986_vm3, %v989_v55, %v992_v57  ;;  %v1070_v34 = vor.u32 %v1069_v43, %v1068_v19  ;;  %v1073_v61 = vshll.u32 %v1072_v62, 23  ;;  %vm1101_vm8 = vcmp.lt.s32.totalorder %v2175_v26, 0 }
 0x11b   :  { %v994_v54 = vsel %vm983_vm15, nan, %v993_v56  ;;  %v1218_v52 = vsub.s32 32, %v1217_v39  ;;  %v2989_v50 = vsub.s32 %v1159_v8, %v1162_v47  ;;  %v1220_v11 = vshll.u32 %v2114_v1, %v1217_v39 }
 0x11c   :  { %v1074_v2 = vor.u32 4788187, %v1073_v61  ;;  %v1077_v63 = vcvt.s32.f32 %v1070_v34  ;;  %1834 = vst [vmem:[#allocation5 + $0x38] sm:$0xff] %v994_v54  ;;  %v1223_v38 = vshll.u32 %v2115_v3, %v1217_v39  ;;  %v1226_v41 = vshll.u32 %v2116_v5, %v1217_v39 }
 0x11d   :  { %v1221_v33 = vshrl.u32 %v2115_v3, %v1218_v52  ;;  %v1224_v22 = vshrl.u32 %v2116_v5, %v1218_v52  ;;  %v1165_v15 = vsub.s32 0, %v2989_v50  ;;  %v1227_v37 = vshrl.u32 %v2117_v7, %v1218_v52 }
 0x11e   :  { %v1075_v24 = vand.u32 2147483647, %v1074_v2  ;;  %v1229_v49 = vshll.u32 %v2117_v7, %v1217_v39  ;;  %v1230_v13 = vshrl.u32 %v2118_v9, %v1218_v52  ;;  %v3001_v8 = vshll.u32 %v1211_v4, 8 }
 0x11f   :  { %v1900_v44 = vmin.u32 %v1165_v15, %v2989_v50  ;;  %v1222_v18 = vor.u32 %v1221_v33, %v1220_v11  ;;  %v1232_v53 = vshll.u32 %v2118_v9, %v1217_v39  ;;  %v1907_v14 = vadd.s32 4294967169, %v1311_v51 }
 0x120   :  { %v1078_v48 = vmul.f32 %v1077_v63, %v1075_v24  ;;  %v1225_v36 = vor.u32 %v1224_v22, %v1223_v38  ;;  %v1231_v23 = vor.u32 %v1230_v13, %v1229_v49  ;;  %v1233_v19 = vshrl.u32 %v2119_v17, %v1218_v52 }
 0x121   :  { %v1167_v60 = vclz %v1900_v44  ;;  %v1219_v59 = vshrl.u32 %v2114_v1, %v1218_v52  ;;  %v1228_v20 = vor.u32 %v1227_v37, %v1226_v41  ;;  %vm1235_vm9 = vcmp.lt.s32.totalorder %v1216_v45, 1 }
 0x122   :  { %v1079_v35 = vxor.u32 2147483648, %v1078_v48  ;;  %v1185_v57 = vsub.s32 4, %v2979_v46  ;;  %v1234_v43 = vor.u32 %v1233_v19, %v1232_v53  ;;  %vm1237_vm11 = vcmp.lt.s32.totalorder %v1216_v45, 3 }
 0x123   :  { %v1901_v16 = vadd.s32 4294967294, %v1167_v60  ;;  %vm1236_vm10 = vcmp.lt.s32.totalorder %v1216_v45, 2  ;;  %vm1238_vm12 = vcmp.lt.s32.totalorder %v1216_v45, 4  ;;  %v1243_v39 = vsel %vm1235_vm9, %v1222_v18, %v1225_v36 }
 0x124   :  { %v1080_v6 = vsel %vm997_vm0, %v1079_v35, %v1078_v48  ;;  %v1240_v55 = vsel %vm1238_vm12, %v1228_v20, 2102212464  ;;  %v1244_v10 = vsel %vm1238_vm12, %v1231_v23, 920167782  ;;  %v1239_v56 = vsel %vm1235_vm9, %v1219_v59, %v1222_v18 }
 0x125   :  { %v1083_v62 = vsel %vm2963_vm1, %v2173_v25, %v1080_v6  ;;  %vm1902_vm13 = vcmp.lt.s32.totalorder %v1901_v16, 0  ;;  %v1245_v34 = vsel %vm1237_vm11, %v1228_v20, %v1244_v10  ;;  %v1241_v42 = vsel %vm1237_vm11, %v1225_v36, %v1240_v55 }
 0x126   :  { %2033 = vcosq.f32 %v1083_v62  ;;  %v1170_v61 = vsel %vm1902_vm13, 0, %v1901_v16  ;;  %v1246_v54 = vsel %vm1236_vm10, %v1243_v39, %v1245_v34  ;;  %v1247_v47 = vsel %vm1235_vm9, %v1225_v36, %v1228_v20 }
 0x127   :  { %2035 = vsinq.f32 %v1083_v62  ;;  %v1171_v52 = vsub.s32 32, %v1170_v61  ;;  %v1172_v2 = vshll.u32 %v2989_v50, %v1170_v61  ;;  %v1175_v63 = vsub.s32 4294967266, %v1170_v61 }
 0x128   :  { %v1248_v4 = vsel %vm1238_vm12, %v1234_v43, 1326507024  ;;  %v1186_v11 = vsel %vm1101_vm8, %v1185_v57, %v2979_v46  ;;  %v3029_v51 = vmul.u32.u64.low %v3001_v8, %v1246_v54  ;;  %v3030_v24 = vmul.u32.u64.high %v3001_v8, %v1246_v54, %v3029_v51 }
 0x129   :  { %v1249_v33 = vsel %vm1237_vm11, %v1231_v23, %v1248_v4  ;;  %v1173_v38 = vshrl.u32 %v1155_v12, %v1171_v52  ;;  %v1176_v22 = vadd.s32 127, %v1175_v63  ;;  %v1242_v15 = vsel %vm1236_vm10, %v1239_v56, %v1241_v42 }
 0x12a   :  { %v1250_v50 = vsel %vm1236_vm10, %v1247_v47, %v1249_v33  ;;  %vm1087_vm14 = vweird.f32 %v2173_v25  ;;  %v1317_v46 = vadd.s32 1, %v1907_v14  ;;  %vm3042_vm0 = vcmp.le.f32.partialorder %v1099_v0, 0.7853982 }
 0x12b   :  { %v3037_v41 = vmul.u32.u64.low %v3001_v8, %v1250_v50  ;;  %v3038_v37 = vmul.u32.u64.high %v3001_v8, %v1250_v50, %v3037_v41  ;;  %v1174_v49 = vor.u32 %v1173_v38, %v1172_v2  ;;  %v1177_v12 = vshll.u32 %v1176_v22, 23 }
 0x12c   :  { %v3048_v13 = vand.u32 8388607, %v1307_v58  ;;  %v1188_v45 = vsel %vm3042_vm0, 0, %v1186_v11  ;;  %v1258_v44 = vmul.u32 %v3001_v8, %v1242_v15  ;;  %v1261_v18 = vadd.s32 1, %v3030_v24 }
 0x12d   :  { %vm1318_vm1 = vcmp.gt.s32.totalorder %v1317_v46, 0  ;;  %vm1090_vm15 = vcmp.lt.s32.totalorder %v2985_v40, 2  ;;  %v1178_v0 = vor.u32 4788187, %v1177_v12  ;;  %v1181_v53 = vcvt.s32.f32 %v1174_v49 }
 0x12e   :  { %v1319_v14 = vsel %vm1318_vm1, %v1317_v46, 0  ;;  %vm1091_vm2 = vcmp.eq.s32.totalorder %v2985_v40, 0  ;;  %vm1094_vm3 = vcmp.eq.s32.totalorder %v2985_v40, 2  ;;  %vm1260_vm5 = vc.u32 %v3038_v37, %v3029_v51 }
 0x12f   :  { %v1321_v36 = vand.u32 31, %v1319_v14  ;;  %v1179_v8 = vand.u32 2147483647, %v1178_v0  ;;  %v1192_v60 = vadd.s32 3, %v1188_v45  ;;  %v1262_v59 = vsel %vm1260_vm5, %v1261_v18, %v3030_v24 }
 0x130   :  { %v2034_v35 = vpop.eup %2033  ;;  %v1263_v6 = vadd.s32 %v1262_v59, %v1258_v44  ;;  %v1315_v57 = vor.u32 8388608, %v3048_v13  ;;  %v3061_v55 = vshrl.u32 %v1319_v14, 5  ;;  %v1414_v38 = vand.u32 2139095040, %v2181_v29 }
 0x131   :  { %v2036_v23 = vpop.eup %2035  ;;  %v1095_v19 = vxor.u32 2147483648, %v2034_v35  ;;  %v1322_v43 = vsub.s32 32, %v1321_v36  ;;  %v1182_v16 = vmul.f32 %v1181_v53, %v1179_v8  ;;  %v1324_v39 = vshll.u32 %v2114_v1, %v1321_v36 }
 0x132   :  { %v1092_v20 = vxor.u32 2147483648, %v2036_v23  ;;  %v1264_v56 = vadd.s32 536870912, %v1263_v6  ;;  %v1327_v61 = vshll.u32 %v2115_v3, %v1321_v36  ;;  %v1330_v52 = vshll.u32 %v2116_v5, %v1321_v36 }
 0x133   :  { %v1096_v62 = vsel %vm1094_vm3, %v1095_v19, %v2036_v23  ;;  %v1325_v34 = vshrl.u32 %v2115_v3, %v1322_v43  ;;  %v1183_v54 = vxor.u32 2147483648, %v1182_v16  ;;  %v1328_v47 = vshrl.u32 %v2116_v5, %v1322_v43 }
 0x134   :  { %v1093_v10 = vsel %vm1091_vm2, %v2034_v35, %v1092_v20  ;;  %v3074_v63 = vshrl.u32 %v1264_v56, 30  ;;  %v1331_v4 = vshrl.u32 %v2117_v7, %v1322_v43  ;;  %v1333_v11 = vshll.u32 %v2117_v7, %v1321_v36 }
 0x135   :  { %v1097_v42 = vsel %vm1090_vm15, %v1093_v10, %v1096_v62  ;;  %v1184_v33 = vsel %vm1101_vm8, %v1183_v54, %v1182_v16  ;;  %v1323_v40 = vshrl.u32 %v2114_v1, %v1322_v43  ;;  %v1334_v24 = vshrl.u32 %v2118_v9, %v1322_v43 }
 0x136   :  { %v1098_v2 = vsel %vm1087_vm14, nan, %v1097_v42  ;;  %v1187_v25 = vsel %vm3042_vm0, %v2175_v26, %v1184_v33  ;;  %v1266_v22 = vshll.u32 %v3074_v63, 30  ;;  %v1326_v15 = vor.u32 %v1325_v34, %v1324_v39 }
 0x137   :  { %1835 = vst [vmem:[#allocation5 + $0x40] sm:$0xff] %v1098_v2  ;;  %v1336_v50 = vshll.u32 %v2118_v9, %v1321_v36  ;;  %2037 = vcosq.f32 %v1187_v25  ;;  %v1329_v41 = vor.u32 %v1328_v47, %v1327_v61  ;;  %v1335_v46 = vor.u32 %v1334_v24, %v1333_v11 }
 0x138   :  { %v1337_v49 = vshrl.u32 %v2119_v17, %v1322_v43  ;;  %2039 = vsinq.f32 %v1187_v25  ;;  %v3089_v12 = vsub.s32 %v1263_v6, %v1266_v22  ;;  %v1332_v13 = vor.u32 %v1331_v4, %v1330_v52 }
 0x139   :  { %vm1339_vm6 = vcmp.lt.s32.totalorder %v3061_v55, 1  ;;  %vm1341_vm4 = vcmp.lt.s32.totalorder %v3061_v55, 3  ;;  %vm1342_vm7 = vcmp.lt.s32.totalorder %v3061_v55, 4  ;;  %v1415_v48 = vshrl.u32 %v1414_v38, 23 }
 0x13a   :  { %v1338_v45 = vor.u32 %v1337_v49, %v1336_v50  ;;  %v1193_v44 = vand.u32 3, %v1192_v60  ;;  %v1269_v18 = vsub.s32 0, %v3089_v12  ;;  %vm1340_vm8 = vcmp.lt.s32.totalorder %v3061_v55, 2 }
 0x13b   :  { %v1344_v0 = vsel %vm1342_vm7, %v1332_v13, 2102212464  ;;  %v1347_v53 = vsel %vm1339_vm6, %v1326_v15, %v1329_v41  ;;  %v1348_v14 = vsel %vm1342_vm7, %v1335_v46, 920167782  ;;  %v1355_v35 = vshll.u32 %v1315_v57, 8 }
 0x13c   :  { %v1411_v36 = vand.u32 2147483647, %v2181_v29  ;;  %vm1191_vm9 = vweird.f32 %v2175_v26  ;;  %vm1205_vm11 = vcmp.lt.s32.totalorder %v2177_v27, 0  ;;  %v1904_v23 = vmin.u32 %v1269_v18, %v3089_v12 }
 0x13d   :  { %v1343_v19 = vsel %vm1339_vm6, %v1323_v40, %v1326_v15  ;;  %v1345_v8 = vsel %vm1341_vm4, %v1329_v41, %v1344_v0  ;;  %v1349_v60 = vsel %vm1341_vm4, %v1332_v13, %v1348_v14  ;;  %v1351_v20 = vsel %vm1339_vm6, %v1329_v41, %v1332_v13 }
 0x13e   :  { %v1350_v59 = vsel %vm1340_vm8, %v1347_v53, %v1349_v60  ;;  %v1352_v6 = vsel %vm1342_vm7, %v1338_v45, 1326507024  ;;  %v1911_v57 = vadd.s32 4294967169, %v1415_v48  ;;  %vm1194_vm10 = vcmp.lt.s32.totalorder %v1193_v44, 2 }
 0x13f   :  { %vm1195_vm12 = vcmp.eq.s32.totalorder %v1193_v44, 0  ;;  %vm1198_vm13 = vcmp.eq.s32.totalorder %v1193_v44, 2  ;;  %v1271_v43 = vclz %v1904_v23  ;;  %v1346_v62 = vsel %vm1340_vm8, %v1343_v19, %v1345_v8 }
 0x140   :  { %v1353_v16 = vsel %vm1341_vm4, %v1335_v46, %v1352_v6  ;;  %v3122_v39 = vmul.u32.u64.low %v1355_v35, %v1350_v59  ;;  %v3123_v10 = vmul.u32.u64.high %v1355_v35, %v1350_v59, %v3122_v39  ;;  %v3130_v61 = vand.u32 8388607, %v1411_v36 }
 0x141   :  { %v1905_v56 = vadd.s32 4294967294, %v1271_v43  ;;  %v1354_v34 = vsel %vm1340_vm8, %v1351_v20, %v1353_v16  ;;  %v1421_v42 = vadd.s32 1, %v1911_v57  ;;  %v2038_v54 = vpop.eup %2037  ;;  %v1259_v47 = vadd.s32 %v3029_v51, %v3038_v37 }
 0x142   :  { %v1289_v52 = vsub.s32 4, %v3074_v63  ;;  %v3135_v2 = vmul.u32.u64.low %v1355_v35, %v1354_v34  ;;  %v3136_v4 = vmul.u32.u64.high %v1355_v35, %v1354_v34, %v3135_v2  ;;  %v2040_v11 = vpop.eup %2039  ;;  %v1199_v33 = vxor.u32 2147483648, %v2038_v54 }
 0x143   :  { %vm1906_vm14 = vcmp.lt.s32.totalorder %v1905_v56, 0  ;;  %v1362_v40 = vmul.u32 %v1355_v35, %v1346_v62  ;;  %vm1422_vm0 = vcmp.gt.s32.totalorder %v1421_v42, 0  ;;  %v1196_v55 = vxor.u32 2147483648, %v2040_v11 }
 0x144   :  { %v1274_v24 = vsel %vm1906_vm14, 0, %v1905_v56  ;;  %v1365_v38 = vadd.s32 1, %v3123_v10  ;;  %v1423_v25 = vsel %vm1422_vm0, %v1421_v42, 0  ;;  %v1200_v22 = vsel %vm1198_vm13, %v1199_v33, %v2040_v11 }
 0x145   :  { %v1275_v15 = vsub.s32 32, %v1274_v24  ;;  %v1276_v51 = vshll.u32 %v3089_v12, %v1274_v24  ;;  %v1279_v37 = vsub.s32 4294967266, %v1274_v24  ;;  %v1197_v50 = vsel %vm1195_vm12, %v2038_v54, %v1196_v55 }
 0x146   :  { %vm3144_vm1 = vcmp.le.f32.partialorder %v1203_v21, 0.7853982  ;;  %v1290_v46 = vsel %vm1205_vm11, %v1289_v52, %v3074_v63  ;;  %vm1364_vm15 = vc.u32 %v3136_v4, %v3122_v39  ;;  %v1201_v49 = vsel %vm1194_vm10, %v1197_v50, %v1200_v22 }
 0x147   :  { %v1277_v13 = vshrl.u32 %v1259_v47, %v1275_v15  ;;  %v1280_v12 = vadd.s32 127, %v1279_v37  ;;  %v1366_v45 = vsel %vm1364_vm15, %v1365_v38, %v3123_v10  ;;  %v1202_v48 = vsel %vm1191_vm9, nan, %v1201_v49 }
 0x148   :  { %v1367_v21 = vadd.s32 %v1366_v45, %v1362_v40  ;;  %v3157_v18 = vshrl.u32 %v1423_v25, 5  ;;  %v1425_v0 = vand.u32 31, %v1423_v25  ;;  %v1292_v63 = vsel %vm3144_vm1, 0, %v1290_v46  ;;  %1836 = vst [vmem:[#allocation5 + $0x48] sm:$0xff] %v1202_v48 }
 0x149   :  { %v1278_v53 = vor.u32 %v1277_v13, %v1276_v51  ;;  %v1281_v14 = vshll.u32 %v1280_v12, 23  ;;  %v1419_v35 = vor.u32 8388608, %v3130_v61  ;;  %v1296_v33 = vadd.s32 3, %v1292_v63 }
 0x14a   :  { %v1368_v44 = vadd.s32 536870912, %v1367_v21  ;;  %v1426_v23 = vsub.s32 32, %v1425_v0  ;;  %v1428_v19 = vshll.u32 %v2114_v1, %v1425_v0  ;;  %v1431_v8 = vshll.u32 %v2115_v3, %v1425_v0 }
 0x14b   :  { %v1282_v26 = vor.u32 4788187, %v1281_v14  ;;  %v1285_v60 = vcvt.s32.f32 %v1278_v53  ;;  %v1434_v59 = vshll.u32 %v2116_v5, %v1425_v0  ;;  %v1437_v20 = vshll.u32 %v2117_v7, %v1425_v0 }
 0x14c   :  { %v1369_v6 = vshrl.u32 %v1368_v44, 30  ;;  %v1429_v57 = vshrl.u32 %v2115_v3, %v1426_v23  ;;  %v1432_v43 = vshrl.u32 %v2116_v5, %v1426_v23  ;;  %vm1443_vm2 = vcmp.lt.s32.totalorder %v3157_v18, 1 }
 0x14d   :  { %v1283_v62 = vand.u32 2147483647, %v1282_v26  ;;  %v1435_v16 = vshrl.u32 %v2117_v7, %v1426_v23  ;;  %v1438_v10 = vshrl.u32 %v2118_v9, %v1426_v23  ;;  %v1440_v56 = vshll.u32 %v2118_v9, %v1425_v0 }
 0x14e   :  { %v1370_v34 = vshll.u32 %v1369_v6, 30  ;;  %v1427_v61 = vshrl.u32 %v2114_v1, %v1426_v23  ;;  %v1430_v42 = vor.u32 %v1429_v57, %v1428_v19  ;;  %v1433_v54 = vor.u32 %v1432_v43, %v1431_v8 }
 0x14f   :  { %v1286_v47 = vmul.f32 %v1285_v60, %v1283_v62  ;;  %v1436_v52 = vor.u32 %v1435_v16, %v1434_v59  ;;  %v1439_v2 = vor.u32 %v1438_v10, %v1437_v20  ;;  %v1441_v11 = vshrl.u32 %v2119_v17, %v1426_v23 }
 0x150   :  { %v3174_v40 = vsub.s32 %v1367_v21, %v1370_v34  ;;  %vm1446_vm3 = vcmp.lt.s32.totalorder %v3157_v18, 4  ;;  %vm1445_vm5 = vcmp.lt.s32.totalorder %v3157_v18, 3  ;;  %vm1444_vm6 = vcmp.lt.s32.totalorder %v3157_v18, 2 }
 0x151   :  { %v1287_v55 = vxor.u32 2147483648, %v1286_v47  ;;  %v1442_v24 = vor.u32 %v1441_v11, %v1440_v56  ;;  %v1448_v38 = vsel %vm1446_vm3, %v1436_v52, 2102212464  ;;  %v1451_v22 = vsel %vm1443_vm2, %v1430_v42, %v1433_v54 }
 0x152   :  { %v1373_v25 = vsub.s32 0, %v3174_v40  ;;  %v1459_v15 = vshll.u32 %v1419_v35, 8  ;;  %v1393_v37 = vsub.s32 4, %v1369_v6  ;;  %v1447_v50 = vsel %vm1443_vm2, %v1427_v61, %v1430_v42 }
 0x153   :  { %v1288_v51 = vsel %vm1205_vm11, %v1287_v55, %v1286_v47  ;;  %v1452_v46 = vsel %vm1446_vm3, %v1439_v2, 920167782  ;;  %v1449_v12 = vsel %vm1445_vm5, %v1433_v54, %v1448_v38  ;;  %v1455_v21 = vsel %vm1443_vm2, %v1433_v54, %v1436_v52 }
 0x154   :  { %v1291_v49 = vsel %vm3144_vm1, %v2177_v27, %v1288_v51  ;;  %v1908_v13 = vmin.u32 %v1373_v25, %v3174_v40  ;;  %v1453_v45 = vsel %vm1445_vm5, %v1436_v52, %v1452_v46  ;;  %v1456_v0 = vsel %vm1446_vm3, %v1442_v24, 1326507024 }
 0x155   :  { %2041 = vcosq.f32 %v1291_v49  ;;  %v1454_v48 = vsel %vm1444_vm6, %v1451_v22, %v1453_v45  ;;  %vm1309_vm4 = vcmp.lt.s32.totalorder %v2179_v28, 0  ;;  %v1457_v14 = vsel %vm1445_vm5, %v1439_v2, %v1456_v0 }
 0x156   :  { %2043 = vsinq.f32 %v1291_v49  ;;  %v1375_v41 = vclz %v1908_v13  ;;  %v1394_v53 = vsel %vm1309_vm4, %v1393_v37, %v1369_v6  ;;  %v1450_v23 = vsel %vm1444_vm6, %v1447_v50, %v1449_v12 }
 0x157   :  { %v3209_v63 = vmul.u32.u64.low %v1459_v15, %v1454_v48  ;;  %v3210_v35 = vmul.u32.u64.high %v1459_v15, %v1454_v48, %v3209_v63  ;;  %v1458_v19 = vsel %vm1444_vm6, %v1455_v21, %v1457_v14  ;;  %v1518_v8 = vand.u32 2139095040, %v2183_v30 }
 0x158   :  { %v1909_v44 = vadd.s32 4294967294, %v1375_v41  ;;  %v1297_v26 = vand.u32 3, %v1296_v33  ;;  %vm3219_vm7 = vcmp.le.f32.partialorder %v1307_v58, 0.7853982  ;;  %v1363_v6 = vadd.s32 %v3122_v39, %v3136_v4 }
 0x159   :  { %v3223_v59 = vmul.u32.u64.low %v1459_v15, %v1458_v19  ;;  %v3224_v20 = vmul.u32.u64.high %v1459_v15, %v1458_v19, %v3223_v59  ;;  %v1515_v57 = vand.u32 2147483647, %v2183_v30  ;;  %v1519_v18 = vshrl.u32 %v1518_v8, 23 }
 0x15a   :  { %vm1910_vm8 = vcmp.lt.s32.totalorder %v1909_v44, 0  ;;  %v1396_v62 = vsel %vm3219_vm7, 0, %v1394_v53  ;;  %v1466_v16 = vmul.u32 %v1459_v15, %v1450_v23  ;;  %v1469_v58 = vadd.s32 1, %v3210_v35 }
 0x15b   :  { %v1378_v43 = vsel %vm1910_vm8, 0, %v1909_v44  ;;  %v1915_v61 = vadd.s32 4294967169, %v1519_v18  ;;  %vm1299_vm9 = vcmp.eq.s32.totalorder %v1297_v26, 0  ;;  %vm1468_vm11 = vc.u32 %v3224_v20, %v3209_v63 }
 0x15c   :  { %v1379_v10 = vsub.s32 32, %v1378_v43  ;;  %v1380_v56 = vshll.u32 %v3174_v40, %v1378_v43  ;;  %v1383_v34 = vsub.s32 4294967266, %v1378_v43  ;;  %v1470_v42 = vsel %vm1468_vm11, %v1469_v58, %v3210_v35 }
 0x15d   :  { %v1525_v54 = vadd.s32 1, %v1915_v61  ;;  %vm1302_vm10 = vcmp.eq.s32.totalorder %v1297_v26, 2  ;;  %v1400_v52 = vadd.s32 3, %v1396_v62  ;;  %v1471_v2 = vadd.s32 %v1470_v42, %v1466_v16 }
 0x15e   :  { %v1381_v39 = vshrl.u32 %v1363_v6, %v1379_v10  ;;  %v1384_v4 = vadd.s32 127, %v1383_v34  ;;  %v1522_v11 = vand.u32 8388607, %v1515_v57  ;;  %vm1298_vm13 = vcmp.lt.s32.totalorder %v1297_v26, 2 }
 0x15f   :  { %v2042_v47 = vpop.eup %2041  ;;  %vm1526_vm12 = vcmp.gt.s32.totalorder %v1525_v54, 0  ;;  %v1472_v25 = vadd.s32 536870912, %v1471_v2  ;;  %vm1295_vm14 = vweird.f32 %v2177_v27  ;;  %v3241_v48 = vand.u32 3, %v1400_v52 }
 0x160   :  { %v2044_v33 = vpop.eup %2043  ;;  %v1303_v55 = vxor.u32 2147483648, %v2042_v47  ;;  %v1382_v40 = vor.u32 %v1381_v39, %v1380_v56  ;;  %v1385_v24 = vshll.u32 %v1384_v4, 23  ;;  %v1527_v22 = vsel %vm1526_vm12, %v1525_v54, 0 }
 0x161   :  { %v1300_v38 = vxor.u32 2147483648, %v2044_v33  ;;  %v3239_v46 = vshrl.u32 %v1472_v25, 30  ;;  %v1523_v49 = vor.u32 8388608, %v1522_v11  ;;  %v1529_v13 = vand.u32 31, %v1527_v22 }
 0x162   :  { %v1304_v15 = vsel %vm1302_vm10, %v1303_v55, %v2044_v33  ;;  %v1386_v51 = vor.u32 4788187, %v1385_v24  ;;  %v1389_v37 = vcvt.s32.f32 %v1382_v40  ;;  %v1622_v21 = vand.u32 2139095040, %v2185_v31 }
 0x163   :  { %v1301_v50 = vsel %vm1299_vm9, %v2042_v47, %v1300_v38  ;;  %v1474_v41 = vshll.u32 %v3239_v46, 30  ;;  %v1528_v53 = vshrl.u32 %v1527_v22, 5  ;;  %v1530_v27 = vsub.s32 32, %v1529_v13 }
 0x164   :  { %v1305_v12 = vsel %vm1298_vm13, %v1301_v50, %v1304_v15  ;;  %v1387_v45 = vand.u32 2147483647, %v1386_v51  ;;  %v1467_v35 = vadd.s32 %v3209_v63, %v3224_v20  ;;  %v1532_v44 = vshll.u32 %v2114_v1, %v1529_v13 }
 0x165   :  { %v1306_v0 = vsel %vm1295_vm14, nan, %v1305_v12  ;;  %v1619_v23 = vand.u32 2147483647, %v2185_v31  ;;  %v3248_v19 = vsub.s32 %v1471_v2, %v1474_v41  ;;  %v1533_v8 = vshrl.u32 %v2115_v3, %v1530_v27 }
 0x166   :  { %v1390_v14 = vmul.f32 %v1389_v37, %v1387_v45  ;;  %1837 = vst [vmem:[#allocation5 + $0x50] sm:$0xff] %v1306_v0  ;;  %v1535_v26 = vshll.u32 %v2115_v3, %v1529_v13  ;;  %v3252_v59 = vshll.u32 %v1523_v49, 8  ;;  %v1536_v18 = vshrl.u32 %v2116_v5, %v1530_v27 }
 0x167   :  { %v1538_v43 = vshll.u32 %v2116_v5, %v1529_v13  ;;  %v1539_v63 = vshrl.u32 %v2117_v7, %v1530_v27  ;;  %v1477_v20 = vsub.s32 0, %v3248_v19  ;;  %v1541_v62 = vshll.u32 %v2117_v7, %v1529_v13 }
 0x168   :  { %v1391_v6 = vxor.u32 2147483648, %v1390_v14  ;;  %vm1547_vm0 = vcmp.lt.s32.totalorder %v1528_v53, 1  ;;  %v1623_v16 = vshrl.u32 %v1622_v21, 23  ;;  %v1531_v10 = vshrl.u32 %v2114_v1, %v1530_v27 }
 0x169   :  { %v1534_v56 = vor.u32 %v1533_v8, %v1532_v44  ;;  %v1542_v34 = vshrl.u32 %v2118_v9, %v1530_v27  ;;  %v1912_v39 = vmin.u32 %v1477_v20, %v3248_v19  ;;  %v1537_v4 = vor.u32 %v1536_v18, %v1535_v26 }
 0x16a   :  { %v1392_v58 = vsel %vm1309_vm4, %v1391_v6, %v1390_v14  ;;  %v1544_v42 = vshll.u32 %v2118_v9, %v1529_v13  ;;  %v1540_v54 = vor.u32 %v1539_v63, %v1538_v43  ;;  %v1545_v52 = vshrl.u32 %v2119_v17, %v1530_v27 }
 0x16b   :  { %v1395_v61 = vsel %vm3219_vm7, %v2179_v28, %v1392_v58  ;;  %v1543_v47 = vor.u32 %v1542_v34, %v1541_v62  ;;  %vm1413_vm1 = vcmp.lt.s32.totalorder %v2181_v29, 0  ;;  %v1479_v2 = vclz %v1912_v39 }
 0x16c   :  { %2045 = vcosq.f32 %v1395_v61  ;;  %vm1549_vm15 = vcmp.lt.s32.totalorder %v1528_v53, 3  ;;  %v1919_v11 = vadd.s32 4294967169, %v1623_v16  ;;  %v1546_v33 = vor.u32 %v1545_v52, %v1544_v42 }
 0x16d   :  { %2047 = vsinq.f32 %v1395_v61  ;;  %vm1548_vm2 = vcmp.lt.s32.totalorder %v1528_v53, 2  ;;  %vm1550_vm3 = vcmp.lt.s32.totalorder %v1528_v53, 4  ;;  %v1551_v60 = vsel %vm1547_vm0, %v1531_v10, %v1534_v56 }
 0x16e   :  { %v1913_v55 = vadd.s32 4294967294, %v1479_v2  ;;  %v1552_v40 = vsel %vm1550_vm3, %v1540_v54, 2102212464  ;;  %v1555_v24 = vsel %vm1547_vm0, %v1534_v56, %v1537_v4  ;;  %v1556_v38 = vsel %vm1550_vm3, %v1543_v47, 920167782 }
 0x16f   :  { %v1553_v25 = vsel %vm1549_vm15, %v1537_v4, %v1552_v40  ;;  %v1557_v22 = vsel %vm1549_vm15, %v1540_v54, %v1556_v38  ;;  %v1559_v15 = vsel %vm1547_vm0, %v1537_v4, %v1540_v54  ;;  %v1560_v51 = vsel %vm1550_vm3, %v1546_v33, 1326507024 }
 0x170   :  { %vm1399_vm5 = vweird.f32 %v2179_v28  ;;  %vm1914_vm6 = vcmp.lt.s32.totalorder %v1913_v55, 0  ;;  %v1497_v37 = vsub.s32 4, %v3239_v46  ;;  %v1558_v50 = vsel %vm1548_vm2, %v1555_v24, %v1557_v22 }
 0x171   :  { %v1561_v49 = vsel %vm1549_vm15, %v1543_v47, %v1560_v51  ;;  %v1482_v13 = vsel %vm1914_vm6, 0, %v1913_v55  ;;  %v3281_v45 = vmul.u32.u64.low %v3252_v59, %v1558_v50  ;;  %v3282_v21 = vmul.u32.u64.high %v3252_v59, %v1558_v50, %v3281_v45 }
 0x172   :  { %v1562_v12 = vsel %vm1548_vm2, %v1559_v15, %v1561_v49  ;;  %v1483_v0 = vsub.s32 32, %v1482_v13  ;;  %v1484_v41 = vshll.u32 %v3248_v19, %v1482_v13  ;;  %v1487_v27 = vsub.s32 4294967266, %v1482_v13 }
 0x173   :  { %v1554_v14 = vsel %vm1548_vm2, %v1551_v60, %v1553_v25  ;;  %vm1403_vm4 = vcmp.eq.s32.totalorder %v3241_v48, 0  ;;  %v3289_v44 = vmul.u32.u64.low %v3252_v59, %v1562_v12  ;;  %v3290_v8 = vmul.u32.u64.high %v3252_v59, %v1562_v12, %v3289_v44 }
 0x174   :  { %v1629_v26 = vadd.s32 1, %v1919_v11  ;;  %vm1406_vm7 = vcmp.eq.s32.totalorder %v3241_v48, 2  ;;  %v1485_v6 = vshrl.u32 %v1467_v35, %v1483_v0  ;;  %v1488_v18 = vadd.s32 127, %v1487_v27 }
 0x175   :  { %v3295_v43 = vand.u32 8388607, %v1619_v23  ;;  %v1498_v53 = vsel %vm1413_vm1, %v1497_v37, %v3239_v46  ;;  %v1570_v19 = vmul.u32 %v3252_v59, %v1554_v14  ;;  %v1573_v20 = vadd.s32 1, %v3282_v21 }
 0x176   :  { %v2046_v63 = vpop.eup %2045  ;;  %vm1630_vm8 = vcmp.gt.s32.totalorder %v1629_v26, 0  ;;  %v1486_v58 = vor.u32 %v1485_v6, %v1484_v41  ;;  %v1489_v10 = vshll.u32 %v1488_v18, 23  ;;  %vm1402_vm9 = vcmp.lt.s32.totalorder %v3241_v48, 2 }
 0x177   :  { %v2048_v62 = vpop.eup %2047  ;;  %v1407_v16 = vxor.u32 2147483648, %v2046_v63  ;;  %v1631_v35 = vsel %vm1630_vm8, %v1629_v26, 0  ;;  %vm3305_vm11 = vcmp.le.f32.partialorder %v1411_v36, 0.7853982  ;;  %vm1572_vm10 = vc.u32 %v3290_v8, %v3281_v45 }
 0x178   :  { %v1404_v56 = vxor.u32 2147483648, %v2048_v62  ;;  %v1490_v59 = vor.u32 4788187, %v1489_v10  ;;  %v1493_v61 = vcvt.s32.f32 %v1486_v58  ;;  %v1574_v39 = vsel %vm1572_vm10, %v1573_v20, %v3282_v21 }
 0x179   :  { %v1408_v46 = vsel %vm1406_vm7, %v1407_v16, %v2048_v62  ;;  %v1500_v42 = vsel %vm3305_vm11, 0, %v1498_v53  ;;  %v1575_v36 = vadd.s32 %v1574_v39, %v1570_v19  ;;  %v1633_v54 = vand.u32 31, %v1631_v35 }
 0x17a   :  { %v1405_v4 = vsel %vm1403_vm4, %v2046_v63, %v1404_v56  ;;  %v1491_v52 = vand.u32 2147483647, %v1490_v59  ;;  %v1627_v2 = vor.u32 8388608, %v3295_v43  ;;  %v1632_v11 = vshrl.u32 %v1631_v35, 5 }
 0x17b   :  { %v1409_v47 = vsel %vm1402_vm9, %v1405_v4, %v1408_v46  ;;  %v1576_v60 = vadd.s32 536870912, %v1575_v36  ;;  %v1634_v55 = vsub.s32 32, %v1633_v54  ;;  %v1636_v40 = vshll.u32 %v2114_v1, %v1633_v54 }
 0x17c   :  { %v1410_v33 = vsel %vm1399_vm5, nan, %v1409_v47  ;;  %v1494_v24 = vmul.f32 %v1493_v61, %v1491_v52  ;;  %v1504_v48 = vadd.s32 3, %v1500_v42  ;;  %v1639_v38 = vshll.u32 %v2115_v3, %v1633_v54 }
 0x17d   :  { %v1645_v25 = vshll.u32 %v2117_v7, %v1633_v54  ;;  %1838 = vst [vmem:[#allocation5 + $0x58] sm:$0xff] %v1410_v33  ;;  %v3324_v22 = vshrl.u32 %v1576_v60, 30  ;;  %v1637_v15 = vshrl.u32 %v2115_v3, %v1634_v55  ;;  %v1640_v51 = vshrl.u32 %v2116_v5, %v1634_v55 }
 0x17e   :  { %v1642_v28 = vshll.u32 %v2116_v5, %v1633_v54  ;;  %v1495_v37 = vxor.u32 2147483648, %v1494_v24  ;;  %v1643_v50 = vshrl.u32 %v2117_v7, %v1634_v55  ;;  %v1646_v49 = vshrl.u32 %v2118_v9, %v1634_v55 }
 0x17f   :  { %v1648_v13 = vshll.u32 %v2118_v9, %v1633_v54  ;;  %v1578_v12 = vshll.u32 %v3324_v22, 30  ;;  %v1635_v21 = vshrl.u32 %v2114_v1, %v1634_v55  ;;  %v1638_v0 = vor.u32 %v1637_v15, %v1636_v40 }
 0x180   :  { %vm1651_vm12 = vcmp.lt.s32.totalorder %v1632_v11, 1  ;;  %v1496_v41 = vsel %vm1413_vm1, %v1495_v37, %v1494_v24  ;;  %v1641_v27 = vor.u32 %v1640_v51, %v1639_v38  ;;  %v1647_v14 = vor.u32 %v1646_v49, %v1645_v25 }
 0x181   :  { %v1649_v44 = vshrl.u32 %v2119_v17, %v1634_v55  ;;  %v1499_v26 = vsel %vm3305_vm11, %v2181_v29, %v1496_v41  ;;  %v3340_v6 = vsub.s32 %v1575_v36, %v1578_v12  ;;  %v1644_v18 = vor.u32 %v1643_v50, %v1642_v28 }
 0x182   :  { %vm1654_vm13 = vcmp.lt.s32.totalorder %v1632_v11, 4  ;;  %2049 = vcosq.f32 %v1499_v26  ;;  %vm1653_vm14 = vcmp.lt.s32.totalorder %v1632_v11, 3  ;;  %vm1652_vm0 = vcmp.lt.s32.totalorder %v1632_v11, 2 }
 0x183   :  { %v1650_v43 = vor.u32 %v1649_v44, %v1648_v13  ;;  %2051 = vsinq.f32 %v1499_v26  ;;  %v1581_v63 = vsub.s32 0, %v3340_v6  ;;  %v1656_v53 = vsel %vm1654_vm13, %v1644_v18, 2102212464 }
 0x184   :  { %v1659_v19 = vsel %vm1651_vm12, %v1638_v0, %v1641_v27  ;;  %v1660_v20 = vsel %vm1654_vm13, %v1647_v14, 920167782  ;;  %v1667_v62 = vshll.u32 %v1627_v2, 8  ;;  %v1726_v16 = vand.u32 2139095040, %v2187_v32 }
 0x185   :  { %v1505_v58 = vand.u32 3, %v1504_v48  ;;  %v1916_v10 = vmin.u32 %v1581_v63, %v3340_v6  ;;  %v1655_v35 = vsel %vm1651_vm12, %v1635_v21, %v1638_v0  ;;  %v1661_v56 = vsel %vm1653_vm14, %v1644_v18, %v1660_v20 }
 0x186   :  { %v1657_v34 = vsel %vm1653_vm14, %v1641_v27, %v1656_v53  ;;  %v1662_v46 = vsel %vm1652_vm0, %v1659_v19, %v1661_v56  ;;  %v1663_v59 = vsel %vm1651_vm12, %v1641_v27, %v1644_v18  ;;  %v1664_v61 = vsel %vm1654_vm13, %v1650_v43, 1326507024 }
 0x187   :  { %vm1503_vm1 = vweird.f32 %v2181_v29  ;;  %v1583_v39 = vclz %v1916_v10  ;;  %v1665_v4 = vsel %vm1653_vm14, %v1647_v14, %v1664_v61  ;;  %v1727_v54 = vshrl.u32 %v1726_v16, 23 }
 0x188   :  { %v3356_v42 = vmul.u32.u64.low %v1667_v62, %v1662_v46  ;;  %v3357_v36 = vmul.u32.u64.high %v1667_v62, %v1662_v46, %v3356_v42  ;;  %vm1506_vm15 = vcmp.lt.s32.totalorder %v1505_v58, 2  ;;  %v1658_v52 = vsel %vm1652_vm0, %v1655_v35, %v1657_v34 }
 0x189   :  { %v1917_v47 = vadd.s32 4294967294, %v1583_v39  ;;  %v1666_v2 = vsel %vm1652_vm0, %v1663_v59, %v1665_v4  ;;  %vm1507_vm2 = vcmp.eq.s32.totalorder %v1505_v58, 0  ;;  %v1923_v55 = vadd.s32 4294967169, %v1727_v54 }
 0x18a   :  { %v3362_v33 = vmul.u32.u64.low %v1667_v62, %v1666_v2  ;;  %v3363_v60 = vmul.u32.u64.high %v1667_v62, %v1666_v2, %v3362_v33  ;;  %vm1510_vm3 = vcmp.eq.s32.totalorder %v1505_v58, 2  ;;  %v1571_v40 = vadd.s32 %v3281_v45, %v3290_v8 }
 0x18b   :  { %vm1918_vm5 = vcmp.lt.s32.totalorder %v1917_v47, 0  ;;  %v1723_v24 = vand.u32 2147483647, %v2187_v32  ;;  %v1674_v25 = vmul.u32 %v1667_v62, %v1658_v52  ;;  %v1677_v15 = vadd.s32 1, %v3357_v36 }
 0x18c   :  { %v2050_v48 = vpop.eup %2049  ;;  %v1586_v38 = vsel %vm1918_vm5, 0, %v1917_v47  ;;  %v1733_v51 = vadd.s32 1, %v1923_v55  ;;  %v1601_v12 = vsub.s32 4, %v3324_v22  ;;  %vm1676_vm6 = vc.u32 %v3363_v60, %v3356_v42 }
 0x18d   :  { %v2052_v11 = vpop.eup %2051  ;;  %v1511_v28 = vxor.u32 2147483648, %v2050_v48  ;;  %v1587_v37 = vsub.s32 32, %v1586_v38  ;;  %v1588_v50 = vshll.u32 %v3340_v6, %v1586_v38  ;;  %v1591_v49 = vsub.s32 4294967266, %v1586_v38 }
 0x18e   :  { %v1508_v13 = vxor.u32 2147483648, %v2052_v11  ;;  %vm1734_vm4 = vcmp.gt.s32.totalorder %v1733_v51, 0  ;;  %v1678_v0 = vsel %vm1676_vm6, %v1677_v15, %v3357_v36  ;;  %v1730_v14 = vand.u32 8388607, %v1723_v24 }
 0x18f   :  { %v1512_v45 = vsel %vm1510_vm3, %v1511_v28, %v2052_v11  ;;  %v1589_v8 = vshrl.u32 %v1571_v40, %v1587_v37  ;;  %v1592_v21 = vadd.s32 127, %v1591_v49  ;;  %v1679_v27 = vadd.s32 %v1678_v0, %v1674_v25 }
 0x190   :  { %v1509_v41 = vsel %vm1507_vm2, %v2050_v48, %v1508_v13  ;;  %v1735_v44 = vsel %vm1734_vm4, %v1733_v51, 0  ;;  %vm1517_vm7 = vcmp.lt.s32.totalorder %v2183_v30, 0  ;;  %vm3384_vm8 = vcmp.le.f32.partialorder %v1515_v57, 0.7853982 }
 0x191   :  { %v1513_v26 = vsel %vm1506_vm15, %v1509_v41, %v1512_v45  ;;  %v1590_v6 = vor.u32 %v1589_v8, %v1588_v50  ;;  %v1593_v18 = vshll.u32 %v1592_v21, 23  ;;  %v1680_v63 = vadd.s32 536870912, %v1679_v27 }
 0x192   :  { %v1514_v43 = vsel %vm1503_vm1, nan, %v1513_v26  ;;  %v1737_v53 = vand.u32 31, %v1735_v44  ;;  %v1602_v16 = vsel %vm1517_vm7, %v1601_v12, %v3324_v22  ;;  %v1731_v29 = vor.u32 8388608, %v1730_v14 }
 0x193   :  { %v1594_v20 = vor.u32 4788187, %v1593_v18  ;;  %v1597_v62 = vcvt.s32.f32 %v1590_v6  ;;  %1839 = vst [vmem:[#allocation5 + $0x60] sm:$0xff] %v1514_v43  ;;  %v3391_v58 = vshrl.u32 %v1680_v63, 30  ;;  %v1736_v10 = vshrl.u32 %v1735_v44, 5 }
 0x194   :  { %v1738_v35 = vsub.s32 32, %v1737_v53  ;;  %v1740_v34 = vshll.u32 %v2114_v1, %v1737_v53  ;;  %v1743_v57 = vshll.u32 %v2115_v3, %v1737_v53  ;;  %v1746_v46 = vshll.u32 %v2116_v5, %v1737_v53 }
 0x195   :  { %v1595_v56 = vand.u32 2147483647, %v1594_v20  ;;  %v1682_v59 = vshll.u32 %v3391_v58, 30  ;;  %v1749_v39 = vshll.u32 %v2117_v7, %v1737_v53  ;;  %v1752_v22 = vshll.u32 %v2118_v9, %v1737_v53 }
 0x196   :  { %v1741_v61 = vshrl.u32 %v2115_v3, %v1738_v35  ;;  %v1744_v36 = vshrl.u32 %v2116_v5, %v1738_v35  ;;  %v1747_v54 = vshrl.u32 %v2117_v7, %v1738_v35  ;;  %v1750_v47 = vshrl.u32 %v2118_v9, %v1738_v35 }
 0x197   :  { %v1598_v4 = vmul.f32 %v1597_v62, %v1595_v56  ;;  %v1604_v52 = vsel %vm3384_vm8, 0, %v1602_v16  ;;  %v1683_v2 = vsub.s32 %v1679_v27, %v1682_v59  ;;  %v1753_v33 = vshrl.u32 %v2119_v17, %v1738_v35 }
 0x198   :  { %v1742_v40 = vor.u32 %v1741_v61, %v1740_v34  ;;  %v1745_v3 = vor.u32 %v1744_v36, %v1743_v57  ;;  %v1771_v48 = vshll.u32 %v1731_v29, 8  ;;  %v1748_v25 = vor.u32 %v1747_v54, %v1746_v46 }
 0x199   :  { %v1599_v55 = vxor.u32 2147483648, %v1598_v4  ;;  %v1685_v38 = vsub.s32 0, %v1683_v2  ;;  %v1751_v15 = vor.u32 %v1750_v47, %v1749_v39  ;;  %vm1755_vm9 = vcmp.lt.s32.totalorder %v1736_v10, 1 }
 0x19a   :  { %v1739_v7 = vshrl.u32 %v2114_v1, %v1738_v35  ;;  %v1754_v9 = vor.u32 %v1753_v33, %v1752_v22  ;;  %vm1758_vm11 = vcmp.lt.s32.totalorder %v1736_v10, 4  ;;  %vm1757_vm10 = vcmp.lt.s32.totalorder %v1736_v10, 3 }
 0x19b   :  { %v1600_v5 = vsel %vm1517_vm7, %v1599_v55, %v1598_v4  ;;  %v1920_v17 = vmin.u32 %v1685_v38, %v1683_v2  ;;  %v1760_v11 = vsel %vm1758_vm11, %v1748_v25, 2102212464  ;;  %vm1756_vm12 = vcmp.lt.s32.totalorder %v1736_v10, 2 }
 0x19c   :  { %v1603_v51 = vsel %vm3384_vm8, %v2183_v30, %v1600_v5  ;;  %v1763_v28 = vsel %vm1755_vm9, %v1742_v40, %v1745_v3  ;;  %v1764_v37 = vsel %vm1758_vm11, %v1751_v15, 920167782  ;;  %v1608_v50 = vadd.s32 3, %v1604_v52 }
 0x19d   :  { %2053 = vcosq.f32 %v1603_v51  ;;  %v1687_v49 = vclz %v1920_v17  ;;  %v1759_v1 = vsel %vm1755_vm9, %v1739_v7, %v1742_v40  ;;  %v1761_v13 = vsel %vm1757_vm10, %v1745_v3, %v1760_v11 }
 0x19e   :  { %2055 = vsinq.f32 %v1603_v51  ;;  %v1765_v12 = vsel %vm1757_vm10, %v1748_v25, %v1764_v37  ;;  %v1767_v45 = vsel %vm1755_vm9, %v1745_v3, %v1748_v25  ;;  %v1768_v0 = vsel %vm1758_vm11, %v1754_v9, 1326507024 }
 0x19f   :  { %v1921_v8 = vadd.s32 4294967294, %v1687_v49  ;;  %v1766_v21 = vsel %vm1756_vm12, %v1763_v28, %v1765_v12  ;;  %v1769_v41 = vsel %vm1757_vm10, %v1751_v15, %v1768_v0  ;;  %v1675_v44 = vadd.s32 %v3356_v42, %v3363_v60 }
 0x1a0   :  { %v3422_v27 = vmul.u32.u64.low %v1771_v48, %v1766_v21  ;;  %v3423_v14 = vmul.u32.u64.high %v1771_v48, %v1766_v21, %v3422_v27  ;;  %v1762_v26 = vsel %vm1756_vm12, %v1759_v1, %v1761_v13  ;;  %v1770_v6 = vsel %vm1756_vm12, %v1767_v45, %v1769_v41 }
 0x1a1   :  { %vm1922_vm13 = vcmp.lt.s32.totalorder %v1921_v8, 0  ;;  %v1609_v18 = vand.u32 3, %v1608_v50  ;;  %v3429_v63 = vmul.u32.u64.low %v1771_v48, %v1770_v6  ;;  %v3430_v53 = vmul.u32.u64.high %v1771_v48, %v1770_v6, %v3429_v63 }
 0x1a2   :  { %v1690_v43 = vsel %vm1922_vm13, 0, %v1921_v8  ;;  %v1778_v16 = vmul.u32 %v1771_v48, %v1762_v26  ;;  %v1781_v29 = vadd.s32 1, %v3423_v14  ;;  %vm1607_vm2 = vweird.f32 %v2183_v30 }
 0x1a3   :  { %v1691_v19 = vsub.s32 32, %v1690_v43  ;;  %v1692_v20 = vshll.u32 %v1683_v2, %v1690_v43  ;;  %v1695_v62 = vsub.s32 4294967266, %v1690_v43  ;;  %vm1611_vm14 = vcmp.eq.s32.totalorder %v1609_v18, 0 }
 0x1a4   :  { %vm1614_vm0 = vcmp.eq.s32.totalorder %v1609_v18, 2  ;;  %vm1780_vm1 = vc.u32 %v3430_v53, %v3422_v27  ;;  %vm1610_vm15 = vcmp.lt.s32.totalorder %v1609_v18, 2  ;;  %v1705_v2 = vsub.s32 4, %v3391_v58 }
 0x1a5   :  { %v1693_v35 = vshrl.u32 %v1675_v44, %v1691_v19  ;;  %v1696_v56 = vadd.s32 127, %v1695_v62  ;;  %v1782_v46 = vsel %vm1780_vm1, %v1781_v29, %v3423_v14  ;;  %vm1621_vm3 = vcmp.lt.s32.totalorder %v2185_v31, 0 }
 0x1a6   :  { %v1783_v61 = vadd.s32 %v1782_v46, %v1778_v16  ;;  %vm1620_vm5 = vcmp.le.f32.partialorder %v1619_v23, 0.7853982  ;;  %v1706_v48 = vsel %vm1621_vm3, %v1705_v2, %v3391_v58  ;;  %v1779_v37 = vadd.s32 %v3422_v27, %v3430_v53 }
 0x1a7   :  { %v2054_v34 = vpop.eup %2053  ;;  %v1694_v10 = vor.u32 %v1693_v35, %v1692_v20  ;;  %v1697_v57 = vshll.u32 %v1696_v56, 23  ;;  %v1708_v5 = vsel %vm1620_vm5, 0, %v1706_v48  ;;  %vm1711_vm9 = vweird.f32 %v2185_v31 }
 0x1a8   :  { %v2056_v42 = vpop.eup %2055  ;;  %v1615_v60 = vxor.u32 2147483648, %v2054_v34  ;;  %v1784_v54 = vadd.s32 536870912, %v1783_v61  ;;  %v1712_v51 = vadd.s32 3, %v1708_v5  ;;  %vm1725_vm11 = vcmp.lt.s32.totalorder %v2187_v32, 0 }
 0x1a9   :  { %v1612_v59 = vxor.u32 2147483648, %v2056_v42  ;;  %v1698_v22 = vor.u32 4788187, %v1697_v57  ;;  %v1701_v4 = vcvt.s32.f32 %v1694_v10  ;;  %vm1724_vm10 = vcmp.le.f32.partialorder %v1723_v24, 0.7853982 }
 0x1aa   :  { %v1616_v39 = vsel %vm1614_vm0, %v1615_v60, %v2056_v42  ;;  %v1785_v55 = vshrl.u32 %v1784_v54, 30  ;;  %v1713_v28 = vand.u32 3, %v1712_v51  ;;  %vm1815_vm0 = vweird.f32 %v2187_v32 }
 0x1ab   :  { %v1613_v36 = vsel %vm1611_vm14, %v2054_v34, %v1612_v59  ;;  %v1699_v52 = vand.u32 2147483647, %v1698_v22 }
 0x1ac   :  { %v1617_v47 = vsel %vm1610_vm15, %v1613_v36, %v1616_v39  ;;  %v1786_v3 = vshll.u32 %v1785_v55, 30  ;;  %vm1718_vm4 = vcmp.eq.s32.totalorder %v1713_v28, 2  ;;  %vm1715_vm7 = vcmp.eq.s32.totalorder %v1713_v28, 0 }
 0x1ad   :  { %v1618_v33 = vsel %vm1607_vm2, nan, %v1617_v47  ;;  %v1702_v40 = vmul.f32 %v1701_v4, %v1699_v52  ;;  %vm1714_vm8 = vcmp.lt.s32.totalorder %v1713_v28, 2  ;;  %v1809_v63 = vsub.s32 4, %v1785_v55 }
 0x1ae   :  { %1840 = vst [vmem:[#allocation5 + $0x68] sm:$0xff] %v1618_v33  ;;  %v1787_v38 = vsub.s32 %v1783_v61, %v1786_v3 }
 0x1af   :  { %v1703_v30 = vxor.u32 2147483648, %v1702_v40  ;;  %v1810_v20 = vsel %vm1725_vm11, %v1809_v63, %v1785_v55 }
 0x1b0   :  { %v1789_v7 = vsub.s32 0, %v1787_v38  ;;  %v1812_v16 = vsel %vm1724_vm10, 0, %v1810_v20 }
 0x1b1   :  { %v1704_v25 = vsel %vm1621_vm3, %v1703_v30, %v1702_v40  ;;  %v1816_v29 = vadd.s32 3, %v1812_v16 }
 0x1b2   :  { %v1707_v15 = vsel %vm1620_vm5, %v2185_v31, %v1704_v25  ;;  %v1924_v9 = vmin.u32 %v1789_v7, %v1787_v38 }
 0x1b3   :  { %2057 = vcosq.f32 %v1707_v15  ;;  %v1817_v35 = vand.u32 3, %v1816_v29 }
 0x1b4   :  { %2059 = vsinq.f32 %v1707_v15  ;;  %v1791_v17 = vclz %v1924_v9 }
 0x1b5   :  { %vm1822_vm12 = vcmp.eq.s32.totalorder %v1817_v35, 2  ;;  %vm1819_vm13 = vcmp.eq.s32.totalorder %v1817_v35, 0  ;;  %vm1818_vm14 = vcmp.lt.s32.totalorder %v1817_v35, 2 }
 0x1b6   :  { %v1925_v11 = vadd.s32 4294967294, %v1791_v17 }
 0x1b8   :  { %vm1926_vm6 = vcmp.lt.s32.totalorder %v1925_v11, 0 }
 0x1b9   :  { %v1794_v23 = vsel %vm1926_vm6, 0, %v1925_v11 }
 0x1ba   :  { %v1795_v50 = vsub.s32 32, %v1794_v23  ;;  %v1796_v49 = vshll.u32 %v1787_v38, %v1794_v23  ;;  %v1799_v58 = vsub.s32 4294967266, %v1794_v23 }
 0x1bc   :  { %v1797_v45 = vshrl.u32 %v1779_v37, %v1795_v50  ;;  %v1800_v8 = vadd.s32 127, %v1799_v58 }
 0x1bd   :  { %v2058_v1 = vpop.eup %2057 }
 0x1be   :  { %v2060_v13 = vpop.eup %2059  ;;  %v1719_v12 = vxor.u32 2147483648, %v2058_v1  ;;  %v1798_v41 = vor.u32 %v1797_v45, %v1796_v49  ;;  %v1801_v14 = vshll.u32 %v1800_v8, 23 }
 0x1bf   :  { %v1716_v21 = vxor.u32 2147483648, %v2060_v13 }
 0x1c0   :  { %v1720_v0 = vsel %vm1718_vm4, %v1719_v12, %v2060_v13  ;;  %v1802_v26 = vor.u32 4788187, %v1801_v14  ;;  %v1805_v6 = vcvt.s32.f32 %v1798_v41 }
 0x1c1   :  { %v1717_v27 = vsel %vm1715_vm7, %v2058_v1, %v1716_v21 }
 0x1c2   :  { %v1721_v44 = vsel %vm1714_vm8, %v1717_v27, %v1720_v0  ;;  %v1803_v43 = vand.u32 2147483647, %v1802_v26 }
 0x1c3   :  { %v1722_v18 = vsel %vm1711_vm9, nan, %v1721_v44 }
 0x1c4   :  { %1841 = vst [vmem:[#allocation5 + $0x70] sm:$0xff] %v1722_v18  ;;  %v1806_v53 = vmul.f32 %v1805_v6, %v1803_v43 }
 0x1c6   :  { %v1807_v19 = vxor.u32 2147483648, %v1806_v53 }
 0x1c8   :  { %v1808_v31 = vsel %vm1725_vm11, %v1807_v19, %v1806_v53 }
 0x1c9   :  { %v1811_v62 = vsel %vm1724_vm10, %v2187_v32, %v1808_v31 }
 0x1ca   :  { %2061 = vcosq.f32 %v1811_v62 }
 0x1cb   :  { %2063 = vsinq.f32 %v1811_v62 }
 0x1d4   :  { %v2062_v56 = vpop.eup %2061 }
 0x1d5   :  { %v2064_v34 = vpop.eup %2063  ;;  %v1823_v42 = vxor.u32 2147483648, %v2062_v56 }
 0x1d6   :  { %v1820_v60 = vxor.u32 2147483648, %v2064_v34 }
 0x1d7   :  { %v1824_v24 = vsel %vm1822_vm12, %v1823_v42, %v2064_v34 }
 0x1d8   :  { %v1821_v10 = vsel %vm1819_vm13, %v2062_v56, %v1820_v60 }
 0x1d9   :  { %v1825_v57 = vsel %vm1818_vm14, %v1821_v10, %v1824_v24 }
 0x1da   :  { %v1826_v46 = vsel %vm1815_vm0, nan, %v1825_v57 }
 0x1db   :  { %1842 = vst [vmem:[#allocation5 + $0x78] sm:$0xff] %v1826_v46 }
 0x1dc   :  { %2098 = shalt.err (!%p2095_p12)
}
 0x1dd   :  { %s2099_s4 = scalar_lea.hbm %s3464_s3, 2048 }
 0x1de   :  { %p2100_p13 = scmp.ne.s32.totalorder %s3464_s3, %s2099_s4  ;;  %p2103_p0 = scmp.lt.u32.totalorder %s2099_s4, %s3464_s3 }
 0x1e0   :  { %p2105_p1 = pnand %p2103_p0, %p2100_p13 }
 0x1e2   :  { %2108 = shalt.err (!%p2105_p1)
}
 0x1e3   :  { %s2121_s9 = smov 128   ;;  %s2122_s10 = smov 8  }
 0x1e4   :  { %1854 = dma.vmem_to_hbm [thread:$0]  %s1849_s27, 2048, %s3464_s3, [#allocation4], %s2121_s9, %s2121_s9, %s2122_s10  }
 0x1e5   :  { %2111 = dma.done.wait [#allocation4], 2048  }
 0x1e6   :  { %2112 = vsyncadd [#allocation4], 4294965248 }
 0x1e7   :  { %1858 = vsyncpa [#allocation3], 1 }
 0x1e8   :  { %1859 = vsyncpa [#allocation4], 1 }

</bundles_post_ra>
